<compile_context>
chip_gen: v6e
topology: v6e:2x2x1
jax: 0.10.0
libtpu: 0.0.40
codegen_flags: <defaults>
</compile_context>

<pallas_src>
import functools

import jax
import jax.numpy as jnp
from jax import lax
from jax.experimental import pallas as pl
from jax.experimental.pallas import tpu as pltpu


# ----------------------------- Pallas kernel -------------------------------

def _fused_qlstm_kernel(T, Bp, num_layers, ids_ref, wv_ref, *refs):
    """Fused embedding + num_layers-deep LSTM over the whole sequence.

    ids_ref : (T*Bp, 1) int32  time-major flattened token ids   (VMEM)
    wv_ref  : (V, D)    f32    embedding table                  (VMEM)
    refs    : per layer [wih_t (Din,4H), whh_t (H,4H), bias (1,4H)], then
              out_ref (Bp, T*H) f32                              (VMEM)
    """
    out_ref = refs[-1]
    layer_refs = refs[:-1]

    V = wv_ref.shape[0]
    H = layer_refs[1].shape[0]          # whh_t of layer 0: (H, 4H)

    # ---- Embedding gather as an exact one-hot GEMM (hoisted, MXU) ----------
    ids = ids_ref[...]                                            # (T*Bp, 1)
    vocab_iota = lax.broadcasted_iota(jnp.int32, (T * Bp, V), 1)  # (T*Bp, V)
    onehot = (ids == vocab_iota).astype(jnp.float32)              # (T*Bp, V)
    x = jnp.dot(onehot, wv_ref[...],
                preferred_element_type=jnp.float32)               # (T*Bp, D)

    for l in range(num_layers):
        wih = layer_refs[3 * l + 0][...]      # (Din, 4H)
        whh = layer_refs[3 * l + 1][...]      # (H,   4H)
        b = layer_refs[3 * l + 2][...]        # (1,   4H)

        # Hoisted input projection + fused bias for the whole sequence.
        gates_in = jnp.dot(x, wih, preferred_element_type=jnp.float32) + b

        h = jnp.zeros((Bp, H), jnp.float32)
        c = jnp.zeros((Bp, H), jnp.float32)
        hs = []
        for t in range(T):                    # fully unrolled, static offsets
            g = gates_in[t * Bp:(t + 1) * Bp, :] + jnp.dot(
                h, whh, preferred_element_type=jnp.float32)       # (Bp, 4H)
            # Apply activations over the full 128-lane gate tile, then slice.
            sg = jax.nn.sigmoid(g)
            th = jnp.tanh(g)
            i_g = sg[:, 0 * H:1 * H]
            f_g = sg[:, 1 * H:2 * H]
            g_g = th[:, 2 * H:3 * H]
            o_g = sg[:, 3 * H:4 * H]
            c = f_g * c + i_g * g_g
            h = o_g * jnp.tanh(c)
            if l + 1 < num_layers:
                hs.append(h)
            else:
                # Pack last-layer h_t into the lane-dense (Bp, T*H) output.
                out_ref[:, t * H:(t + 1) * H] = h.astype(out_ref.dtype)
        if l + 1 < num_layers:
            x = jnp.concatenate(hs, axis=0)   # (T*Bp, H) -> next layer input


# ----------------------------- wrapper --------------------------------------

@jax.jit
def q_lstm_forward(params, question):
    """question: (B, T) int32 token ids -> (lstm_out (B,T,H), out_tensor (B,H))."""
    B, T = question.shape
    num_layers = len(params["layers"])
    H = params["layers"][0]["whh_t"].shape[0]

    # Pad batch to the f32 sublane tile (8) so every vreg/MXU row is used.
    Bp = max(8, -(-B // 8) * 8)
    ids = jnp.zeros((Bp, T), jnp.int32).at[:B].set(question)
    ids_flat = ids.T.reshape(T * Bp, 1)       # time-major, flattened

    flat_w = []
    for layer in params["layers"]:
        flat_w += [layer["wih_t"], layer["whh_t"], layer["bias"]]

    kernel = functools.partial(_fused_qlstm_kernel, T, Bp, num_layers)
    vmem = pl.BlockSpec(memory_space=pltpu.MemorySpace.VMEM)

    out = pl.pallas_call(
        kernel,
        out_shape=jax.ShapeDtypeStruct((Bp, T * H), jnp.float32),
        in_specs=[vmem] * (2 + len(flat_w)),
        out_specs=vmem,
    )(ids_flat, params["word_vectors"], *flat_w)

    lstm_out = out.reshape(Bp, T, H)[:B]      # (B, T, H), batch_first
    out_tensor = lstm_out[:, -1, :]           # == lstm_out.permute(1,0,2)[-1]
    return lstm_out, out_tensor


# ----------------------------- parameters -----------------------------------

def init_q_lstm_params(key, vocab_size, hidden_size, word_dim=150, num_layers=2):
    """Synthetic params; weights pre-transposed and biases pre-fused at init."""
    keys = jax.random.split(key, 1 + 4 * num_layers)
    params = {
        "word_vectors": jax.random.normal(keys[0], (vocab_size, word_dim),
                                          jnp.float32),
        "layers": [],
    }
    bound = 1.0 / jnp.sqrt(hidden_size)
    for l in range(num_layers):
        in_dim = word_dim if l == 0 else hidden_size
        k = keys[1 + 4 * l: 1 + 4 * (l + 1)]
        w_ih = jax.random.uniform(k[0], (4 * hidden_size, in_dim),
                                  jnp.float32, -bound, bound)
        w_hh = jax.random.uniform(k[1], (4 * hidden_size, hidden_size),
                                  jnp.float32, -bound, bound)
        b_ih = jax.random.uniform(k[2], (4 * hidden_size,),
                                  jnp.float32, -bound, bound)
        b_hh = jax.random.uniform(k[3], (4 * hidden_size,),
                                  jnp.float32, -bound, bound)
        params["layers"].append({
            "wih_t": w_ih.T,                            # (in_dim, 4H)
            "whh_t": w_hh.T,                            # (H, 4H)
            "bias": (b_ih + b_hh).reshape(1, -1),       # (1, 4H)
        })
    return params


# ----------------------------- pure-JAX reference ---------------------------

def _ref_forward(params, question):
    emb = jnp.take(params["word_vectors"], question, axis=0)     # (B, T, D)
    x = jnp.transpose(emb, (1, 0, 2))                            # (T, B, D)
    for layer in params["layers"]:
        H = layer["whh_t"].shape[0]
        wih_t, whh_t, b = layer["wih_t"], layer["whh_t"], layer["bias"]

        def step(carry, x_t):
            h, c = carry
            gates = x_t @ wih_t + h @ whh_t + b
            i = jax.nn.sigmoid(gates[:, 0 * H:1 * H])
            f = jax.nn.sigmoid(gates[:, 1 * H:2 * H])
            g = jnp.tanh(gates[:, 2 * H:3 * H])
            o = jax.nn.sigmoid(gates[:, 3 * H:4 * H])
            c = f * c + i * g
            h = o * jnp.tanh(c)
            return (h, c), h

        B = x.shape[1]
        h0 = jnp.zeros((B, H), jnp.float32)
        c0 = jnp.zeros((B, H), jnp.float32)
        _, x = lax.scan(step, (h0, c0), x)
    lstm_out = jnp.transpose(x, (1, 0, 2))
    return lstm_out, lstm_out[:, -1, :]


# --------------------------------- main -------------------------------------

if __name__ == "__main__":
    VOCAB = 50
    WORD_DIM = 150
    HIDDEN = 32
    NUM_LAYERS = 2
    BATCH = 2
    SEQ = 8

    key = jax.random.PRNGKey(0)
    pkey, qkey = jax.random.split(key)
    params = init_q_lstm_params(pkey, VOCAB, HIDDEN, WORD_DIM, NUM_LAYERS)
    question = jax.random.randint(qkey, (BATCH, SEQ), 0, VOCAB, dtype=jnp.int32)

    lstm_out, out_tensor = q_lstm_forward(params, question)
    jax.block_until_ready((lstm_out, out_tensor))

    ref_out, ref_last = _ref_forward(params, question)
    assert lstm_out.shape == (BATCH, SEQ, HIDDEN)
    assert out_tensor.shape == (BATCH, HIDDEN)
    assert jnp.allclose(lstm_out, ref_out, rtol=1e-3, atol=2e-3)
    assert jnp.allclose(out_tensor, ref_last, rtol=1e-3, atol=2e-3)

    print("KERNEL_OK")
</pallas_src>

<mosaic_0001>
module attributes {stable_mosaic.version = 11 : i64} {
  func.func @_fused_qlstm_kernel(%arg0: memref<64x1xi32, #tpu.memory_space<vmem>>, %arg1: memref<50x150xf32, #tpu.memory_space<vmem>>, %arg2: memref<150x128xf32, #tpu.memory_space<vmem>>, %arg3: memref<32x128xf32, #tpu.memory_space<vmem>>, %arg4: memref<1x128xf32, #tpu.memory_space<vmem>>, %arg5: memref<32x128xf32, #tpu.memory_space<vmem>>, %arg6: memref<32x128xf32, #tpu.memory_space<vmem>>, %arg7: memref<1x128xf32, #tpu.memory_space<vmem>>, %arg8: memref<8x256xf32, #tpu.memory_space<vmem>>) attributes {dimension_semantics = [], scalar_prefetch = 0 : i64, scratch_operands = 0 : i64, tpu.core_type = #tpu.core_type<tc>} {
    %c0 = arith.constant 0 : index
    %c0_0 = arith.constant 0 : index
    %0 = vector.load %arg0[%c0, %c0_0] : memref<64x1xi32, #tpu.memory_space<vmem>>, vector<64x1xi32>
    %1 = tpu.iota {dimensions = array<i32: 1>} : vector<64x50xi32>
    %2 = vector.broadcast %0 : vector<64x1xi32> to vector<64x50xi32>
    %3 = arith.cmpi eq, %2, %1 : vector<64x50xi32>
    %4 = arith.extui %3 : vector<64x50xi1> to vector<64x50xi32>
    %5 = arith.sitofp %4 : vector<64x50xi32> to vector<64x50xf32>
    %c0_1 = arith.constant 0 : index
    %c0_2 = arith.constant 0 : index
    %6 = vector.load %arg1[%c0_1, %c0_2] : memref<50x150xf32, #tpu.memory_space<vmem>>, vector<50x150xf32>
    %cst = arith.constant dense<0.000000e+00> : vector<64x150xf32>
    %7 = tpu.matmul %5, %6, %cst {dimension_numbers = #tpu.dot_dimension_numbers<[1], [0], [0], [1], [0, 0, 1, 1], [], []>} : vector<64x50xf32>, vector<50x150xf32>, vector<64x150xf32> -> vector<64x150xf32>
    %c0_3 = arith.constant 0 : index
    %c0_4 = arith.constant 0 : index
    %8 = vector.load %arg2[%c0_3, %c0_4] : memref<150x128xf32, #tpu.memory_space<vmem>>, vector<150x128xf32>
    %c0_5 = arith.constant 0 : index
    %c0_6 = arith.constant 0 : index
    %9 = vector.load %arg3[%c0_5, %c0_6] : memref<32x128xf32, #tpu.memory_space<vmem>>, vector<32x128xf32>
    %c0_7 = arith.constant 0 : index
    %c0_8 = arith.constant 0 : index
    %10 = vector.load %arg4[%c0_7, %c0_8] : memref<1x128xf32, #tpu.memory_space<vmem>>, vector<1x128xf32>
    %cst_9 = arith.constant dense<0.000000e+00> : vector<64x128xf32>
    %11 = tpu.matmul %7, %8, %cst_9 {dimension_numbers = #tpu.dot_dimension_numbers<[1], [0], [0], [1], [0, 0, 1, 1], [], []>} : vector<64x150xf32>, vector<150x128xf32>, vector<64x128xf32> -> vector<64x128xf32>
    %12 = vector.broadcast %10 : vector<1x128xf32> to vector<64x128xf32>
    %13 = arith.addf %11, %12 : vector<64x128xf32>
    %cst_10 = arith.constant 0.000000e+00 : f32
    %14 = vector.broadcast %cst_10 : f32 to vector<8x32xf32>
    %cst_11 = arith.constant 0.000000e+00 : f32
    %15 = vector.broadcast %cst_11 : f32 to vector<8x32xf32>
    %16 = vector.extract_strided_slice %13 {offsets = [0, 0], sizes = [8, 128], strides = [1, 1]} : vector<64x128xf32> to vector<8x128xf32>
    %cst_12 = arith.constant dense<0.000000e+00> : vector<8x128xf32>
    %17 = tpu.matmul %14, %9, %cst_12 {dimension_numbers = #tpu.dot_dimension_numbers<[1], [0], [0], [1], [0, 0, 1, 1], [], []>} : vector<8x32xf32>, vector<32x128xf32>, vector<8x128xf32> -> vector<8x128xf32>
    %18 = arith.addf %16, %17 : vector<8x128xf32>
    %19 = arith.negf %18 : vector<8x128xf32>
    %20 = math.exp %19 : vector<8x128xf32>
    %cst_13 = arith.constant 1.000000e+00 : f32
    %21 = vector.broadcast %cst_13 : f32 to vector<8x128xf32>
    %22 = arith.addf %21, %20 : vector<8x128xf32>
    %23 = arith.divf %21, %22 : vector<8x128xf32>
    %24 = math.tanh %18 : vector<8x128xf32>
    %25 = vector.extract_strided_slice %23 {offsets = [0, 0], sizes = [8, 32], strides = [1, 1]} : vector<8x128xf32> to vector<8x32xf32>
    %26 = vector.extract_strided_slice %23 {offsets = [0, 32], sizes = [8, 32], strides = [1, 1]} : vector<8x128xf32> to vector<8x32xf32>
    %27 = vector.extract_strided_slice %24 {offsets = [0, 64], sizes = [8, 32], strides = [1, 1]} : vector<8x128xf32> to vector<8x32xf32>
    %28 = vector.extract_strided_slice %23 {offsets = [0, 96], sizes = [8, 32], strides = [1, 1]} : vector<8x128xf32> to vector<8x32xf32>
    %29 = arith.mulf %26, %15 : vector<8x32xf32>
    %30 = arith.mulf %25, %27 : vector<8x32xf32>
    %31 = arith.addf %29, %30 : vector<8x32xf32>
    %32 = math.tanh %31 : vector<8x32xf32>
    %33 = arith.mulf %28, %32 : vector<8x32xf32>
    %34 = vector.extract_strided_slice %13 {offsets = [8, 0], sizes = [8, 128], strides = [1, 1]} : vector<64x128xf32> to vector<8x128xf32>
    %cst_14 = arith.constant dense<0.000000e+00> : vector<8x128xf32>
    %35 = tpu.matmul %33, %9, %cst_14 {dimension_numbers = #tpu.dot_dimension_numbers<[1], [0], [0], [1], [0, 0, 1, 1], [], []>} : vector<8x32xf32>, vector<32x128xf32>, vector<8x128xf32> -> vector<8x128xf32>
    %36 = arith.addf %34, %35 : vector<8x128xf32>
    %37 = arith.negf %36 : vector<8x128xf32>
    %38 = math.exp %37 : vector<8x128xf32>
    %cst_15 = arith.constant 1.000000e+00 : f32
    %39 = vector.broadcast %cst_15 : f32 to vector<8x128xf32>
    %40 = arith.addf %39, %38 : vector<8x128xf32>
    %41 = arith.divf %39, %40 : vector<8x128xf32>
    %42 = math.tanh %36 : vector<8x128xf32>
    %43 = vector.extract_strided_slice %41 {offsets = [0, 0], sizes = [8, 32], strides = [1, 1]} : vector<8x128xf32> to vector<8x32xf32>
    %44 = vector.extract_strided_slice %41 {offsets = [0, 32], sizes = [8, 32], strides = [1, 1]} : vector<8x128xf32> to vector<8x32xf32>
    %45 = vector.extract_strided_slice %42 {offsets = [0, 64], sizes = [8, 32], strides = [1, 1]} : vector<8x128xf32> to vector<8x32xf32>
    %46 = vector.extract_strided_slice %41 {offsets = [0, 96], sizes = [8, 32], strides = [1, 1]} : vector<8x128xf32> to vector<8x32xf32>
    %47 = arith.mulf %44, %31 : vector<8x32xf32>
    %48 = arith.mulf %43, %45 : vector<8x32xf32>
    %49 = arith.addf %47, %48 : vector<8x32xf32>
    %50 = math.tanh %49 : vector<8x32xf32>
    %51 = arith.mulf %46, %50 : vector<8x32xf32>
    %52 = vector.extract_strided_slice %13 {offsets = [16, 0], sizes = [8, 128], strides = [1, 1]} : vector<64x128xf32> to vector<8x128xf32>
    %cst_16 = arith.constant dense<0.000000e+00> : vector<8x128xf32>
    %53 = tpu.matmul %51, %9, %cst_16 {dimension_numbers = #tpu.dot_dimension_numbers<[1], [0], [0], [1], [0, 0, 1, 1], [], []>} : vector<8x32xf32>, vector<32x128xf32>, vector<8x128xf32> -> vector<8x128xf32>
    %54 = arith.addf %52, %53 : vector<8x128xf32>
    %55 = arith.negf %54 : vector<8x128xf32>
    %56 = math.exp %55 : vector<8x128xf32>
    %cst_17 = arith.constant 1.000000e+00 : f32
    %57 = vector.broadcast %cst_17 : f32 to vector<8x128xf32>
    %58 = arith.addf %57, %56 : vector<8x128xf32>
    %59 = arith.divf %57, %58 : vector<8x128xf32>
    %60 = math.tanh %54 : vector<8x128xf32>
    %61 = vector.extract_strided_slice %59 {offsets = [0, 0], sizes = [8, 32], strides = [1, 1]} : vector<8x128xf32> to vector<8x32xf32>
    %62 = vector.extract_strided_slice %59 {offsets = [0, 32], sizes = [8, 32], strides = [1, 1]} : vector<8x128xf32> to vector<8x32xf32>
    %63 = vector.extract_strided_slice %60 {offsets = [0, 64], sizes = [8, 32], strides = [1, 1]} : vector<8x128xf32> to vector<8x32xf32>
    %64 = vector.extract_strided_slice %59 {offsets = [0, 96], sizes = [8, 32], strides = [1, 1]} : vector<8x128xf32> to vector<8x32xf32>
    %65 = arith.mulf %62, %49 : vector<8x32xf32>
    %66 = arith.mulf %61, %63 : vector<8x32xf32>
    %67 = arith.addf %65, %66 : vector<8x32xf32>
    %68 = math.tanh %67 : vector<8x32xf32>
    %69 = arith.mulf %64, %68 : vector<8x32xf32>
    %70 = vector.extract_strided_slice %13 {offsets = [24, 0], sizes = [8, 128], strides = [1, 1]} : vector<64x128xf32> to vector<8x128xf32>
    %cst_18 = arith.constant dense<0.000000e+00> : vector<8x128xf32>
    %71 = tpu.matmul %69, %9, %cst_18 {dimension_numbers = #tpu.dot_dimension_numbers<[1], [0], [0], [1], [0, 0, 1, 1], [], []>} : vector<8x32xf32>, vector<32x128xf32>, vector<8x128xf32> -> vector<8x128xf32>
    %72 = arith.addf %70, %71 : vector<8x128xf32>
    %73 = arith.negf %72 : vector<8x128xf32>
    %74 = math.exp %73 : vector<8x128xf32>
    %cst_19 = arith.constant 1.000000e+00 : f32
    %75 = vector.broadcast %cst_19 : f32 to vector<8x128xf32>
    %76 = arith.addf %75, %74 : vector<8x128xf32>
    %77 = arith.divf %75, %76 : vector<8x128xf32>
    %78 = math.tanh %72 : vector<8x128xf32>
    %79 = vector.extract_strided_slice %77 {offsets = [0, 0], sizes = [8, 32], strides = [1, 1]} : vector<8x128xf32> to vector<8x32xf32>
    %80 = vector.extract_strided_slice %77 {offsets = [0, 32], sizes = [8, 32], strides = [1, 1]} : vector<8x128xf32> to vector<8x32xf32>
    %81 = vector.extract_strided_slice %78 {offsets = [0, 64], sizes = [8, 32], strides = [1, 1]} : vector<8x128xf32> to vector<8x32xf32>
    %82 = vector.extract_strided_slice %77 {offsets = [0, 96], sizes = [8, 32], strides = [1, 1]} : vector<8x128xf32> to vector<8x32xf32>
    %83 = arith.mulf %80, %67 : vector<8x32xf32>
    %84 = arith.mulf %79, %81 : vector<8x32xf32>
    %85 = arith.addf %83, %84 : vector<8x32xf32>
    %86 = math.tanh %85 : vector<8x32xf32>
    %87 = arith.mulf %82, %86 : vector<8x32xf32>
    %88 = vector.extract_strided_slice %13 {offsets = [32, 0], sizes = [8, 128], strides = [1, 1]} : vector<64x128xf32> to vector<8x128xf32>
    %cst_20 = arith.constant dense<0.000000e+00> : vector<8x128xf32>
    %89 = tpu.matmul %87, %9, %cst_20 {dimension_numbers = #tpu.dot_dimension_numbers<[1], [0], [0], [1], [0, 0, 1, 1], [], []>} : vector<8x32xf32>, vector<32x128xf32>, vector<8x128xf32> -> vector<8x128xf32>
    %90 = arith.addf %88, %89 : vector<8x128xf32>
    %91 = arith.negf %90 : vector<8x128xf32>
    %92 = math.exp %91 : vector<8x128xf32>
    %cst_21 = arith.constant 1.000000e+00 : f32
    %93 = vector.broadcast %cst_21 : f32 to vector<8x128xf32>
    %94 = arith.addf %93, %92 : vector<8x128xf32>
    %95 = arith.divf %93, %94 : vector<8x128xf32>
    %96 = math.tanh %90 : vector<8x128xf32>
    %97 = vector.extract_strided_slice %95 {offsets = [0, 0], sizes = [8, 32], strides = [1, 1]} : vector<8x128xf32> to vector<8x32xf32>
    %98 = vector.extract_strided_slice %95 {offsets = [0, 32], sizes = [8, 32], strides = [1, 1]} : vector<8x128xf32> to vector<8x32xf32>
    %99 = vector.extract_strided_slice %96 {offsets = [0, 64], sizes = [8, 32], strides = [1, 1]} : vector<8x128xf32> to vector<8x32xf32>
    %100 = vector.extract_strided_slice %95 {offsets = [0, 96], sizes = [8, 32], strides = [1, 1]} : vector<8x128xf32> to vector<8x32xf32>
    %101 = arith.mulf %98, %85 : vector<8x32xf32>
    %102 = arith.mulf %97, %99 : vector<8x32xf32>
    %103 = arith.addf %101, %102 : vector<8x32xf32>
    %104 = math.tanh %103 : vector<8x32xf32>
    %105 = arith.mulf %100, %104 : vector<8x32xf32>
    %106 = vector.extract_strided_slice %13 {offsets = [40, 0], sizes = [8, 128], strides = [1, 1]} : vector<64x128xf32> to vector<8x128xf32>
    %cst_22 = arith.constant dense<0.000000e+00> : vector<8x128xf32>
    %107 = tpu.matmul %105, %9, %cst_22 {dimension_numbers = #tpu.dot_dimension_numbers<[1], [0], [0], [1], [0, 0, 1, 1], [], []>} : vector<8x32xf32>, vector<32x128xf32>, vector<8x128xf32> -> vector<8x128xf32>
    %108 = arith.addf %106, %107 : vector<8x128xf32>
    %109 = arith.negf %108 : vector<8x128xf32>
    %110 = math.exp %109 : vector<8x128xf32>
    %cst_23 = arith.constant 1.000000e+00 : f32
    %111 = vector.broadcast %cst_23 : f32 to vector<8x128xf32>
    %112 = arith.addf %111, %110 : vector<8x128xf32>
    %113 = arith.divf %111, %112 : vector<8x128xf32>
    %114 = math.tanh %108 : vector<8x128xf32>
    %115 = vector.extract_strided_slice %113 {offsets = [0, 0], sizes = [8, 32], strides = [1, 1]} : vector<8x128xf32> to vector<8x32xf32>
    %116 = vector.extract_strided_slice %113 {offsets = [0, 32], sizes = [8, 32], strides = [1, 1]} : vector<8x128xf32> to vector<8x32xf32>
    %117 = vector.extract_strided_slice %114 {offsets = [0, 64], sizes = [8, 32], strides = [1, 1]} : vector<8x128xf32> to vector<8x32xf32>
    %118 = vector.extract_strided_slice %113 {offsets = [0, 96], sizes = [8, 32], strides = [1, 1]} : vector<8x128xf32> to vector<8x32xf32>
    %119 = arith.mulf %116, %103 : vector<8x32xf32>
    %120 = arith.mulf %115, %117 : vector<8x32xf32>
    %121 = arith.addf %119, %120 : vector<8x32xf32>
    %122 = math.tanh %121 : vector<8x32xf32>
    %123 = arith.mulf %118, %122 : vector<8x32xf32>
    %124 = vector.extract_strided_slice %13 {offsets = [48, 0], sizes = [8, 128], strides = [1, 1]} : vector<64x128xf32> to vector<8x128xf32>
    %cst_24 = arith.constant dense<0.000000e+00> : vector<8x128xf32>
    %125 = tpu.matmul %123, %9, %cst_24 {dimension_numbers = #tpu.dot_dimension_numbers<[1], [0], [0], [1], [0, 0, 1, 1], [], []>} : vector<8x32xf32>, vector<32x128xf32>, vector<8x128xf32> -> vector<8x128xf32>
    %126 = arith.addf %124, %125 : vector<8x128xf32>
    %127 = arith.negf %126 : vector<8x128xf32>
    %128 = math.exp %127 : vector<8x128xf32>
    %cst_25 = arith.constant 1.000000e+00 : f32
    %129 = vector.broadcast %cst_25 : f32 to vector<8x128xf32>
    %130 = arith.addf %129, %128 : vector<8x128xf32>
    %131 = arith.divf %129, %130 : vector<8x128xf32>
    %132 = math.tanh %126 : vector<8x128xf32>
    %133 = vector.extract_strided_slice %131 {offsets = [0, 0], sizes = [8, 32], strides = [1, 1]} : vector<8x128xf32> to vector<8x32xf32>
    %134 = vector.extract_strided_slice %131 {offsets = [0, 32], sizes = [8, 32], strides = [1, 1]} : vector<8x128xf32> to vector<8x32xf32>
    %135 = vector.extract_strided_slice %132 {offsets = [0, 64], sizes = [8, 32], strides = [1, 1]} : vector<8x128xf32> to vector<8x32xf32>
    %136 = vector.extract_strided_slice %131 {offsets = [0, 96], sizes = [8, 32], strides = [1, 1]} : vector<8x128xf32> to vector<8x32xf32>
    %137 = arith.mulf %134, %121 : vector<8x32xf32>
    %138 = arith.mulf %133, %135 : vector<8x32xf32>
    %139 = arith.addf %137, %138 : vector<8x32xf32>
    %140 = math.tanh %139 : vector<8x32xf32>
    %141 = arith.mulf %136, %140 : vector<8x32xf32>
    %142 = vector.extract_strided_slice %13 {offsets = [56, 0], sizes = [8, 128], strides = [1, 1]} : vector<64x128xf32> to vector<8x128xf32>
    %cst_26 = arith.constant dense<0.000000e+00> : vector<8x128xf32>
    %143 = tpu.matmul %141, %9, %cst_26 {dimension_numbers = #tpu.dot_dimension_numbers<[1], [0], [0], [1], [0, 0, 1, 1], [], []>} : vector<8x32xf32>, vector<32x128xf32>, vector<8x128xf32> -> vector<8x128xf32>
    %144 = arith.addf %142, %143 : vector<8x128xf32>
    %145 = arith.negf %144 : vector<8x128xf32>
    %146 = math.exp %145 : vector<8x128xf32>
    %cst_27 = arith.constant 1.000000e+00 : f32
    %147 = vector.broadcast %cst_27 : f32 to vector<8x128xf32>
    %148 = arith.addf %147, %146 : vector<8x128xf32>
    %149 = arith.divf %147, %148 : vector<8x128xf32>
    %150 = math.tanh %144 : vector<8x128xf32>
    %151 = vector.extract_strided_slice %149 {offsets = [0, 0], sizes = [8, 32], strides = [1, 1]} : vector<8x128xf32> to vector<8x32xf32>
    %152 = vector.extract_strided_slice %149 {offsets = [0, 32], sizes = [8, 32], strides = [1, 1]} : vector<8x128xf32> to vector<8x32xf32>
    %153 = vector.extract_strided_slice %150 {offsets = [0, 64], sizes = [8, 32], strides = [1, 1]} : vector<8x128xf32> to vector<8x32xf32>
    %154 = vector.extract_strided_slice %149 {offsets = [0, 96], sizes = [8, 32], strides = [1, 1]} : vector<8x128xf32> to vector<8x32xf32>
    %155 = arith.mulf %152, %139 : vector<8x32xf32>
    %156 = arith.mulf %151, %153 : vector<8x32xf32>
    %157 = arith.addf %155, %156 : vector<8x32xf32>
    %158 = math.tanh %157 : vector<8x32xf32>
    %159 = arith.mulf %154, %158 : vector<8x32xf32>
    %160 = tpu.concatenate %33, %51, %69, %87, %105, %123, %141, %159 in 0 : vector<8x32xf32>, vector<8x32xf32>, vector<8x32xf32>, vector<8x32xf32>, vector<8x32xf32>, vector<8x32xf32>, vector<8x32xf32>, vector<8x32xf32> -> vector<64x32xf32>
    %c0_28 = arith.constant 0 : index
    %c0_29 = arith.constant 0 : index
    %161 = vector.load %arg5[%c0_28, %c0_29] : memref<32x128xf32, #tpu.memory_space<vmem>>, vector<32x128xf32>
    %c0_30 = arith.constant 0 : index
    %c0_31 = arith.constant 0 : index
    %162 = vector.load %arg6[%c0_30, %c0_31] : memref<32x128xf32, #tpu.memory_space<vmem>>, vector<32x128xf32>
    %c0_32 = arith.constant 0 : index
    %c0_33 = arith.constant 0 : index
    %163 = vector.load %arg7[%c0_32, %c0_33] : memref<1x128xf32, #tpu.memory_space<vmem>>, vector<1x128xf32>
    %cst_34 = arith.constant dense<0.000000e+00> : vector<64x128xf32>
    %164 = tpu.matmul %160, %161, %cst_34 {dimension_numbers = #tpu.dot_dimension_numbers<[1], [0], [0], [1], [0, 0, 1, 1], [], []>} : vector<64x32xf32>, vector<32x128xf32>, vector<64x128xf32> -> vector<64x128xf32>
    %165 = vector.broadcast %163 : vector<1x128xf32> to vector<64x128xf32>
    %166 = arith.addf %164, %165 : vector<64x128xf32>
    %cst_35 = arith.constant 0.000000e+00 : f32
    %167 = vector.broadcast %cst_35 : f32 to vector<8x32xf32>
    %cst_36 = arith.constant 0.000000e+00 : f32
    %168 = vector.broadcast %cst_36 : f32 to vector<8x32xf32>
    %169 = vector.extract_strided_slice %166 {offsets = [0, 0], sizes = [8, 128], strides = [1, 1]} : vector<64x128xf32> to vector<8x128xf32>
    %cst_37 = arith.constant dense<0.000000e+00> : vector<8x128xf32>
    %170 = tpu.matmul %167, %162, %cst_37 {dimension_numbers = #tpu.dot_dimension_numbers<[1], [0], [0], [1], [0, 0, 1, 1], [], []>} : vector<8x32xf32>, vector<32x128xf32>, vector<8x128xf32> -> vector<8x128xf32>
    %171 = arith.addf %169, %170 : vector<8x128xf32>
    %172 = arith.negf %171 : vector<8x128xf32>
    %173 = math.exp %172 : vector<8x128xf32>
    %cst_38 = arith.constant 1.000000e+00 : f32
    %174 = vector.broadcast %cst_38 : f32 to vector<8x128xf32>
    %175 = arith.addf %174, %173 : vector<8x128xf32>
    %176 = arith.divf %174, %175 : vector<8x128xf32>
    %177 = math.tanh %171 : vector<8x128xf32>
    %178 = vector.extract_strided_slice %176 {offsets = [0, 0], sizes = [8, 32], strides = [1, 1]} : vector<8x128xf32> to vector<8x32xf32>
    %179 = vector.extract_strided_slice %176 {offsets = [0, 32], sizes = [8, 32], strides = [1, 1]} : vector<8x128xf32> to vector<8x32xf32>
    %180 = vector.extract_strided_slice %177 {offsets = [0, 64], sizes = [8, 32], strides = [1, 1]} : vector<8x128xf32> to vector<8x32xf32>
    %181 = vector.extract_strided_slice %176 {offsets = [0, 96], sizes = [8, 32], strides = [1, 1]} : vector<8x128xf32> to vector<8x32xf32>
    %182 = arith.mulf %179, %168 : vector<8x32xf32>
    %183 = arith.mulf %178, %180 : vector<8x32xf32>
    %184 = arith.addf %182, %183 : vector<8x32xf32>
    %185 = math.tanh %184 : vector<8x32xf32>
    %186 = arith.mulf %181, %185 : vector<8x32xf32>
    %c0_39 = arith.constant 0 : index
    %c0_40 = arith.constant 0 : index
    %187 = vector.load %arg8[%c0_39, %c0_40] : memref<8x256xf32, #tpu.memory_space<vmem>>, vector<8x32xf32>
    tpu.vector_store %arg8[%c0_39, %c0_40], %186 {strides = array<i32>} : memref<8x256xf32, #tpu.memory_space<vmem>>, vector<8x32xf32>,
    %188 = vector.extract_strided_slice %166 {offsets = [8, 0], sizes = [8, 128], strides = [1, 1]} : vector<64x128xf32> to vector<8x128xf32>
    %cst_41 = arith.constant dense<0.000000e+00> : vector<8x128xf32>
    %189 = tpu.matmul %186, %162, %cst_41 {dimension_numbers = #tpu.dot_dimension_numbers<[1], [0], [0], [1], [0, 0, 1, 1], [], []>} : vector<8x32xf32>, vector<32x128xf32>, vector<8x128xf32> -> vector<8x128xf32>
    %190 = arith.addf %188, %189 : vector<8x128xf32>
    %191 = arith.negf %190 : vector<8x128xf32>
    %192 = math.exp %191 : vector<8x128xf32>
    %cst_42 = arith.constant 1.000000e+00 : f32
    %193 = vector.broadcast %cst_42 : f32 to vector<8x128xf32>
    %194 = arith.addf %193, %192 : vector<8x128xf32>
    %195 = arith.divf %193, %194 : vector<8x128xf32>
    %196 = math.tanh %190 : vector<8x128xf32>
    %197 = vector.extract_strided_slice %195 {offsets = [0, 0], sizes = [8, 32], strides = [1, 1]} : vector<8x128xf32> to vector<8x32xf32>
    %198 = vector.extract_strided_slice %195 {offsets = [0, 32], sizes = [8, 32], strides = [1, 1]} : vector<8x128xf32> to vector<8x32xf32>
    %199 = vector.extract_strided_slice %196 {offsets = [0, 64], sizes = [8, 32], strides = [1, 1]} : vector<8x128xf32> to vector<8x32xf32>
    %200 = vector.extract_strided_slice %195 {offsets = [0, 96], sizes = [8, 32], strides = [1, 1]} : vector<8x128xf32> to vector<8x32xf32>
    %201 = arith.mulf %198, %184 : vector<8x32xf32>
    %202 = arith.mulf %197, %199 : vector<8x32xf32>
    %203 = arith.addf %201, %202 : vector<8x32xf32>
    %204 = math.tanh %203 : vector<8x32xf32>
    %205 = arith.mulf %200, %204 : vector<8x32xf32>
    %c0_43 = arith.constant 0 : index
    %c32 = arith.constant 32 : index
    %206 = vector.load %arg8[%c0_43, %c32] : memref<8x256xf32, #tpu.memory_space<vmem>>, vector<8x32xf32>
    tpu.vector_store %arg8[%c0_43, %c32], %205 {strides = array<i32>} : memref<8x256xf32, #tpu.memory_space<vmem>>, vector<8x32xf32>,
    %207 = vector.extract_strided_slice %166 {offsets = [16, 0], sizes = [8, 128], strides = [1, 1]} : vector<64x128xf32> to vector<8x128xf32>
    %cst_44 = arith.constant dense<0.000000e+00> : vector<8x128xf32>
    %208 = tpu.matmul %205, %162, %cst_44 {dimension_numbers = #tpu.dot_dimension_numbers<[1], [0], [0], [1], [0, 0, 1, 1], [], []>} : vector<8x32xf32>, vector<32x128xf32>, vector<8x128xf32> -> vector<8x128xf32>
    %209 = arith.addf %207, %208 : vector<8x128xf32>
    %210 = arith.negf %209 : vector<8x128xf32>
    %211 = math.exp %210 : vector<8x128xf32>
    %cst_45 = arith.constant 1.000000e+00 : f32
    %212 = vector.broadcast %cst_45 : f32 to vector<8x128xf32>
    %213 = arith.addf %212, %211 : vector<8x128xf32>
    %214 = arith.divf %212, %213 : vector<8x128xf32>
    %215 = math.tanh %209 : vector<8x128xf32>
    %216 = vector.extract_strided_slice %214 {offsets = [0, 0], sizes = [8, 32], strides = [1, 1]} : vector<8x128xf32> to vector<8x32xf32>
    %217 = vector.extract_strided_slice %214 {offsets = [0, 32], sizes = [8, 32], strides = [1, 1]} : vector<8x128xf32> to vector<8x32xf32>
    %218 = vector.extract_strided_slice %215 {offsets = [0, 64], sizes = [8, 32], strides = [1, 1]} : vector<8x128xf32> to vector<8x32xf32>
    %219 = vector.extract_strided_slice %214 {offsets = [0, 96], sizes = [8, 32], strides = [1, 1]} : vector<8x128xf32> to vector<8x32xf32>
    %220 = arith.mulf %217, %203 : vector<8x32xf32>
    %221 = arith.mulf %216, %218 : vector<8x32xf32>
    %222 = arith.addf %220, %221 : vector<8x32xf32>
    %223 = math.tanh %222 : vector<8x32xf32>
    %224 = arith.mulf %219, %223 : vector<8x32xf32>
    %c0_46 = arith.constant 0 : index
    %c64 = arith.constant 64 : index
    %225 = vector.load %arg8[%c0_46, %c64] : memref<8x256xf32, #tpu.memory_space<vmem>>, vector<8x32xf32>
    tpu.vector_store %arg8[%c0_46, %c64], %224 {strides = array<i32>} : memref<8x256xf32, #tpu.memory_space<vmem>>, vector<8x32xf32>,
    %226 = vector.extract_strided_slice %166 {offsets = [24, 0], sizes = [8, 128], strides = [1, 1]} : vector<64x128xf32> to vector<8x128xf32>
    %cst_47 = arith.constant dense<0.000000e+00> : vector<8x128xf32>
    %227 = tpu.matmul %224, %162, %cst_47 {dimension_numbers = #tpu.dot_dimension_numbers<[1], [0], [0], [1], [0, 0, 1, 1], [], []>} : vector<8x32xf32>, vector<32x128xf32>, vector<8x128xf32> -> vector<8x128xf32>
    %228 = arith.addf %226, %227 : vector<8x128xf32>
    %229 = arith.negf %228 : vector<8x128xf32>
    %230 = math.exp %229 : vector<8x128xf32>
    %cst_48 = arith.constant 1.000000e+00 : f32
    %231 = vector.broadcast %cst_48 : f32 to vector<8x128xf32>
    %232 = arith.addf %231, %230 : vector<8x128xf32>
    %233 = arith.divf %231, %232 : vector<8x128xf32>
    %234 = math.tanh %228 : vector<8x128xf32>
    %235 = vector.extract_strided_slice %233 {offsets = [0, 0], sizes = [8, 32], strides = [1, 1]} : vector<8x128xf32> to vector<8x32xf32>
    %236 = vector.extract_strided_slice %233 {offsets = [0, 32], sizes = [8, 32], strides = [1, 1]} : vector<8x128xf32> to vector<8x32xf32>
    %237 = vector.extract_strided_slice %234 {offsets = [0, 64], sizes = [8, 32], strides = [1, 1]} : vector<8x128xf32> to vector<8x32xf32>
    %238 = vector.extract_strided_slice %233 {offsets = [0, 96], sizes = [8, 32], strides = [1, 1]} : vector<8x128xf32> to vector<8x32xf32>
    %239 = arith.mulf %236, %222 : vector<8x32xf32>
    %240 = arith.mulf %235, %237 : vector<8x32xf32>
    %241 = arith.addf %239, %240 : vector<8x32xf32>
    %242 = math.tanh %241 : vector<8x32xf32>
    %243 = arith.mulf %238, %242 : vector<8x32xf32>
    %c0_49 = arith.constant 0 : index
    %c96 = arith.constant 96 : index
    %244 = vector.load %arg8[%c0_49, %c96] : memref<8x256xf32, #tpu.memory_space<vmem>>, vector<8x32xf32>
    tpu.vector_store %arg8[%c0_49, %c96], %243 {strides = array<i32>} : memref<8x256xf32, #tpu.memory_space<vmem>>, vector<8x32xf32>,
    %245 = vector.extract_strided_slice %166 {offsets = [32, 0], sizes = [8, 128], strides = [1, 1]} : vector<64x128xf32> to vector<8x128xf32>
    %cst_50 = arith.constant dense<0.000000e+00> : vector<8x128xf32>
    %246 = tpu.matmul %243, %162, %cst_50 {dimension_numbers = #tpu.dot_dimension_numbers<[1], [0], [0], [1], [0, 0, 1, 1], [], []>} : vector<8x32xf32>, vector<32x128xf32>, vector<8x128xf32> -> vector<8x128xf32>
    %247 = arith.addf %245, %246 : vector<8x128xf32>
    %248 = arith.negf %247 : vector<8x128xf32>
    %249 = math.exp %248 : vector<8x128xf32>
    %cst_51 = arith.constant 1.000000e+00 : f32
    %250 = vector.broadcast %cst_51 : f32 to vector<8x128xf32>
    %251 = arith.addf %250, %249 : vector<8x128xf32>
    %252 = arith.divf %250, %251 : vector<8x128xf32>
    %253 = math.tanh %247 : vector<8x128xf32>
    %254 = vector.extract_strided_slice %252 {offsets = [0, 0], sizes = [8, 32], strides = [1, 1]} : vector<8x128xf32> to vector<8x32xf32>
    %255 = vector.extract_strided_slice %252 {offsets = [0, 32], sizes = [8, 32], strides = [1, 1]} : vector<8x128xf32> to vector<8x32xf32>
    %256 = vector.extract_strided_slice %253 {offsets = [0, 64], sizes = [8, 32], strides = [1, 1]} : vector<8x128xf32> to vector<8x32xf32>
    %257 = vector.extract_strided_slice %252 {offsets = [0, 96], sizes = [8, 32], strides = [1, 1]} : vector<8x128xf32> to vector<8x32xf32>
    %258 = arith.mulf %255, %241 : vector<8x32xf32>
    %259 = arith.mulf %254, %256 : vector<8x32xf32>
    %260 = arith.addf %258, %259 : vector<8x32xf32>
    %261 = math.tanh %260 : vector<8x32xf32>
    %262 = arith.mulf %257, %261 : vector<8x32xf32>
    %c0_52 = arith.constant 0 : index
    %c128 = arith.constant 128 : index
    %263 = vector.load %arg8[%c0_52, %c128] : memref<8x256xf32, #tpu.memory_space<vmem>>, vector<8x32xf32>
    tpu.vector_store %arg8[%c0_52, %c128], %262 {strides = array<i32>} : memref<8x256xf32, #tpu.memory_space<vmem>>, vector<8x32xf32>,
    %264 = vector.extract_strided_slice %166 {offsets = [40, 0], sizes = [8, 128], strides = [1, 1]} : vector<64x128xf32> to vector<8x128xf32>
    %cst_53 = arith.constant dense<0.000000e+00> : vector<8x128xf32>
    %265 = tpu.matmul %262, %162, %cst_53 {dimension_numbers = #tpu.dot_dimension_numbers<[1], [0], [0], [1], [0, 0, 1, 1], [], []>} : vector<8x32xf32>, vector<32x128xf32>, vector<8x128xf32> -> vector<8x128xf32>
    %266 = arith.addf %264, %265 : vector<8x128xf32>
    %267 = arith.negf %266 : vector<8x128xf32>
    %268 = math.exp %267 : vector<8x128xf32>
    %cst_54 = arith.constant 1.000000e+00 : f32
    %269 = vector.broadcast %cst_54 : f32 to vector<8x128xf32>
    %270 = arith.addf %269, %268 : vector<8x128xf32>
    %271 = arith.divf %269, %270 : vector<8x128xf32>
    %272 = math.tanh %266 : vector<8x128xf32>
    %273 = vector.extract_strided_slice %271 {offsets = [0, 0], sizes = [8, 32], strides = [1, 1]} : vector<8x128xf32> to vector<8x32xf32>
    %274 = vector.extract_strided_slice %271 {offsets = [0, 32], sizes = [8, 32], strides = [1, 1]} : vector<8x128xf32> to vector<8x32xf32>
    %275 = vector.extract_strided_slice %272 {offsets = [0, 64], sizes = [8, 32], strides = [1, 1]} : vector<8x128xf32> to vector<8x32xf32>
    %276 = vector.extract_strided_slice %271 {offsets = [0, 96], sizes = [8, 32], strides = [1, 1]} : vector<8x128xf32> to vector<8x32xf32>
    %277 = arith.mulf %274, %260 : vector<8x32xf32>
    %278 = arith.mulf %273, %275 : vector<8x32xf32>
    %279 = arith.addf %277, %278 : vector<8x32xf32>
    %280 = math.tanh %279 : vector<8x32xf32>
    %281 = arith.mulf %276, %280 : vector<8x32xf32>
    %c0_55 = arith.constant 0 : index
    %c160 = arith.constant 160 : index
    %282 = vector.load %arg8[%c0_55, %c160] : memref<8x256xf32, #tpu.memory_space<vmem>>, vector<8x32xf32>
    tpu.vector_store %arg8[%c0_55, %c160], %281 {strides = array<i32>} : memref<8x256xf32, #tpu.memory_space<vmem>>, vector<8x32xf32>,
    %283 = vector.extract_strided_slice %166 {offsets = [48, 0], sizes = [8, 128], strides = [1, 1]} : vector<64x128xf32> to vector<8x128xf32>
    %cst_56 = arith.constant dense<0.000000e+00> : vector<8x128xf32>
    %284 = tpu.matmul %281, %162, %cst_56 {dimension_numbers = #tpu.dot_dimension_numbers<[1], [0], [0], [1], [0, 0, 1, 1], [], []>} : vector<8x32xf32>, vector<32x128xf32>, vector<8x128xf32> -> vector<8x128xf32>
    %285 = arith.addf %283, %284 : vector<8x128xf32>
    %286 = arith.negf %285 : vector<8x128xf32>
    %287 = math.exp %286 : vector<8x128xf32>
    %cst_57 = arith.constant 1.000000e+00 : f32
    %288 = vector.broadcast %cst_57 : f32 to vector<8x128xf32>
    %289 = arith.addf %288, %287 : vector<8x128xf32>
    %290 = arith.divf %288, %289 : vector<8x128xf32>
    %291 = math.tanh %285 : vector<8x128xf32>
    %292 = vector.extract_strided_slice %290 {offsets = [0, 0], sizes = [8, 32], strides = [1, 1]} : vector<8x128xf32> to vector<8x32xf32>
    %293 = vector.extract_strided_slice %290 {offsets = [0, 32], sizes = [8, 32], strides = [1, 1]} : vector<8x128xf32> to vector<8x32xf32>
    %294 = vector.extract_strided_slice %291 {offsets = [0, 64], sizes = [8, 32], strides = [1, 1]} : vector<8x128xf32> to vector<8x32xf32>
    %295 = vector.extract_strided_slice %290 {offsets = [0, 96], sizes = [8, 32], strides = [1, 1]} : vector<8x128xf32> to vector<8x32xf32>
    %296 = arith.mulf %293, %279 : vector<8x32xf32>
    %297 = arith.mulf %292, %294 : vector<8x32xf32>
    %298 = arith.addf %296, %297 : vector<8x32xf32>
    %299 = math.tanh %298 : vector<8x32xf32>
    %300 = arith.mulf %295, %299 : vector<8x32xf32>
    %c0_58 = arith.constant 0 : index
    %c192 = arith.constant 192 : index
    %301 = vector.load %arg8[%c0_58, %c192] : memref<8x256xf32, #tpu.memory_space<vmem>>, vector<8x32xf32>
    tpu.vector_store %arg8[%c0_58, %c192], %300 {strides = array<i32>} : memref<8x256xf32, #tpu.memory_space<vmem>>, vector<8x32xf32>,
    %302 = vector.extract_strided_slice %166 {offsets = [56, 0], sizes = [8, 128], strides = [1, 1]} : vector<64x128xf32> to vector<8x128xf32>
    %cst_59 = arith.constant dense<0.000000e+00> : vector<8x128xf32>
    %303 = tpu.matmul %300, %162, %cst_59 {dimension_numbers = #tpu.dot_dimension_numbers<[1], [0], [0], [1], [0, 0, 1, 1], [], []>} : vector<8x32xf32>, vector<32x128xf32>, vector<8x128xf32> -> vector<8x128xf32>
    %304 = arith.addf %302, %303 : vector<8x128xf32>
    %305 = arith.negf %304 : vector<8x128xf32>
    %306 = math.exp %305 : vector<8x128xf32>
    %cst_60 = arith.constant 1.000000e+00 : f32
    %307 = vector.broadcast %cst_60 : f32 to vector<8x128xf32>
    %308 = arith.addf %307, %306 : vector<8x128xf32>
    %309 = arith.divf %307, %308 : vector<8x128xf32>
    %310 = math.tanh %304 : vector<8x128xf32>
    %311 = vector.extract_strided_slice %309 {offsets = [0, 0], sizes = [8, 32], strides = [1, 1]} : vector<8x128xf32> to vector<8x32xf32>
    %312 = vector.extract_strided_slice %309 {offsets = [0, 32], sizes = [8, 32], strides = [1, 1]} : vector<8x128xf32> to vector<8x32xf32>
    %313 = vector.extract_strided_slice %310 {offsets = [0, 64], sizes = [8, 32], strides = [1, 1]} : vector<8x128xf32> to vector<8x32xf32>
    %314 = vector.extract_strided_slice %309 {offsets = [0, 96], sizes = [8, 32], strides = [1, 1]} : vector<8x128xf32> to vector<8x32xf32>
    %315 = arith.mulf %312, %298 : vector<8x32xf32>
    %316 = arith.mulf %311, %313 : vector<8x32xf32>
    %317 = arith.addf %315, %316 : vector<8x32xf32>
    %318 = math.tanh %317 : vector<8x32xf32>
    %319 = arith.mulf %314, %318 : vector<8x32xf32>
    %c0_61 = arith.constant 0 : index
    %c224 = arith.constant 224 : index
    %320 = vector.load %arg8[%c0_61, %c224] : memref<8x256xf32, #tpu.memory_space<vmem>>, vector<8x32xf32>
    tpu.vector_store %arg8[%c0_61, %c224], %319 {strides = array<i32>} : memref<8x256xf32, #tpu.memory_space<vmem>>, vector<8x32xf32>,
    return
  }
}

</mosaic_0001>

<bundles_post_ra>
// kernel: q_lstm_forward.1
= control target key start
LH: loop header
LB: loop body
LE: loop exit
PB: predicated region body
PF: predicated region fallthrough
CT: control target
= control target key end

     0   :  { %13 = vsyncpa [#allocation3], 0  ;;  %s3275_s0 = inlined_call_operand.vmem [shape: s32[64,1], index: 0, kind: input, shape index: {}]   ;;  %s3276_s1 = inlined_call_operand.hbm [shape: f32[50,150], index: 1, kind: input, shape index: {}]   ;;  %s3277_s2 = inlined_call_operand.hbm [shape: f32[150,128], index: 2, kind: input, shape index: {}]   ;;  %s3278_s3 = inlined_call_operand.vmem [shape: f32[32,128], index: 3, kind: input, shape index: {}]   ;;  %s3279_s4 = inlined_call_operand.vmem [shape: f32[1,128], index: 4, kind: input, shape index: {}]   ;;  %s3280_s5 = inlined_call_operand.vmem [shape: f32[32,128], index: 5, kind: input, shape index: {}]   ;;  %s3281_s6 = inlined_call_operand.vmem [shape: f32[32,128], index: 6, kind: input, shape index: {}]   ;;  %s3282_s7 = inlined_call_operand.vmem [shape: f32[1,128], index: 7, kind: input, shape index: {}]   ;;  %s3283_s8 = inlined_call_operand.vmem [shape: f32[8,256], index: 8, kind: output, shape index: {}]  }
   0x1   :  { %14 = vsyncpa [#allocation5], 0  ;;  %s2729_s27 = smov [#allocation2]  }
   0x2   :  { %s22_s28 = sshll.u32 %s2729_s27, 4  ;;  %s23_s28 = int_to_ptr.vmem [resolvable:$true] %s22_s28 }
   0x3   :  { %s2693_s29 = scalar_lea.vmem %s23_s28, 1792  ;;  %p2698_p1 = scmp.lt.s32.totalorder %s23_s28, %s23_s28 }
   0x4   :  { %p2694_p0 = scmp.ne.s32.totalorder %s23_s28, %s2693_s29  ;;  %p2699_p2 = scmp.lt.s32.totalorder %s2693_s29, %s2693_s29 }
   0x6   :  { %p2700_p3 = por %p2699_p2, %p2698_p1 }
   0x8   :  { %p2701_p4 = pnand %p2700_p3, %p2694_p0 }
   0xa   :  { %2704 = shalt.err (!%p2701_p4)
}
   0xb   :  { %s2730_s30 = smov 256   ;;  %s2731_s9 = smov 16  }
   0xc   :  { %28 = dma.hbm_to_vmem [thread:$0]  %s3276_s1, 1792, %s23_s28, [#allocation3], %s2730_s30, %s2730_s30, %s2731_s9  }
   0xd   :  { %s2732_s12 = smov [#allocation4]  }
   0xe   :  { %s34_s13 = sshll.u32 %s2732_s12, 4  ;;  %s35_s13 = int_to_ptr.vmem [resolvable:$true] %s34_s13 }
   0xf   :  { %s2713_s14 = scalar_lea.vmem %s35_s13, 2432  ;;  %p2718_p6 = scmp.lt.s32.totalorder %s35_s13, %s35_s13 }
  0x10   :  { %p2714_p5 = scmp.ne.s32.totalorder %s35_s13, %s2713_s14  ;;  %p2719_p7 = scmp.lt.s32.totalorder %s2713_s14, %s2713_s14 }
  0x12   :  { %p2720_p8 = por %p2719_p7, %p2718_p6 }
  0x14   :  { %p2721_p9 = pnand %p2720_p8, %p2714_p5 }
  0x16   :  { %2724 = shalt.err (!%p2721_p9)
}
  0x17   :  { %s2733_s15 = smov 128   ;;  %s2734_s16 = smov 8  }
  0x18   :  { %40 = dma.hbm_to_vmem [thread:$0]  %s3277_s2, 2432, %s35_s13, [#allocation5], %s2733_s15, %s2733_s15, %s2734_s16  }
  0x19   :  { %2725 = dma.done.wait [#allocation3], 1792  }
  0x1a   :  { %2726 = vsyncadd [#allocation3], 4294965504 }
  0x1b   :  { %2727 = dma.done.wait [#allocation5], 2432  }
  0x1c   :  { %2728 = vsyncadd [#allocation5], 4294964864  ;;  %v2735_v0 = vmov 0   ;;  %v2736_v1 = vmov 0.0   ;;  %v57_v2 = vld [vmem:[%s3275_s0] sm:$0xff]  ;;  %v59_v3 = vld [vmem:[%s3275_s0 + $0x10] sm:$0xff]  ;;  %v65_v41 = vlaneseq }
  0x1d   :  { %2555 = vset.pattern.permute.xlu0 %v2735_v0  ;;  %2556 = vset.pattern.permute.xlu1 %v2735_v0  ;;  %vm154_vm0 = vcmask 1041408   ;;  %v58_v4 = vld [vmem:[%s3275_s0 + $0x8] sm:$0xff]  ;;  %v60_v5 = vld [vmem:[%s3275_s0 + $0x18] sm:$0xff]  ;;  %v127_v7 = vld [vmem:[#allocation2 + $0x60] sm:$0x3]  ;;  %vm329_vm1 = vcmask 1045504  }
  0x1e   :  { %225 = vmatprep.mubr.f32.mxu0 %v2736_v1  ;;  %333 = vmatprep.subr.mxu1 %v2736_v1  ;;  %v128_v6 = vld [vmem:[#allocation2 + $0x68] sm:$0x3]  ;;  %v126_v8 = vld [vmem:[#allocation2 + $0x58] sm:$0xff]  ;;  %v125_v9 = vld [vmem:[#allocation2 + $0x50] sm:$0xff]  ;;  %v66_v42 = vand.u32 127, %v65_v41  ;;  %vm129_vm2 = vcmask 408576  }
  0x1f   :  { %68 = vperm.xlu0 %2555, %v57_v2   ;;  %74 = vperm.xlu1 %2556, %v59_v3   ;;  %v124_v10 = vld [vmem:[#allocation2 + $0x48] sm:$0xff]  ;;  %v61_v11 = vld [vmem:[%s3275_s0 + $0x20] sm:$0xff]  ;;  %v122_v14 = vld [vmem:[#allocation2 + $0x38] sm:$0xff]  ;;  %vm2737_vm11 = vmmov 0   ;;  %vm304_vm12 = vcmask 179200   ;;  %s2739_s1 = smov 32  }
  0x20   :  { %2196 = vmatprep.subr.msk.mxu0 %vm154_vm0, %v128_v6  ;;  %v62_v12 = vld [vmem:[%s3275_s0 + $0x28] sm:$0xff]  ;;  %v123_v13 = vld [vmem:[#allocation2 + $0x40] sm:$0xff]  ;;  %v121_v15 = vld [vmem:[#allocation2 + $0x30] sm:$0xff]  ;;  %vm438_vm13 = vcmask 261120   ;;  %vm1563_vm14 = vcmask 523520   ;;  %s2740_s16 = smov 96  }
  0x21   :  { %2197 = vmatpush1.msk.msra.mxu0 %vm154_vm0, %v127_v7  ;;  %v63_v16 = vld [vmem:[%s3275_s0 + $0x30] sm:$0xff]  ;;  %v120_v17 = vld [vmem:[#allocation2 + $0x28] sm:$0xff]  ;;  %v119_v18 = vld [vmem:[#allocation2 + $0x20] sm:$0xff]  ;;  %vm1668_vm15 = vcmask 785920   ;;  %vm1769_vm0 = vcmask 1048320  }
  0x22   :  { %181 = vmatprep.subr.mxu0 %v126_v8  ;;  %v118_v19 = vld [vmem:[#allocation2 + $0x18] sm:$0xff]  ;;  %v117_v20 = vld [vmem:[#allocation2 + $0x10] sm:$0xff]  ;;  %v116_v21 = vld [vmem:[#allocation2 + $0x8] sm:$0xff] }
  0x23   :  { %71 = vperm.xlu0 %2555, %v58_v4   ;;  %77 = vperm.xlu1 %2556, %v60_v5   ;;  %v115_v22 = vld [vmem:[#allocation2] sm:$0xff]  ;;  %v64_v23 = vld [vmem:[%s3275_s0 + $0x38] sm:$0xff]  ;;  %v289_v24 = vld [vmem:[#allocation4 + $0x78] sm:$0xff] }
  0x24   :  { %182 = vmatpush1.msra.mxu0 %v125_v9  ;;  %v288_v25 = vld [vmem:[#allocation4 + $0x70] sm:$0xff]  ;;  %334 = vmatpush1.msra.mxu1 %v289_v24  ;;  %v287_v26 = vld [vmem:[#allocation4 + $0x68] sm:$0xff]  ;;  %v286_v27 = vld [vmem:[#allocation4 + $0x60] sm:$0xff] }
  0x25   :  { %183 = vmatprep.subr.mxu0 %v124_v10  ;;  %335 = vmatprep.subr.mxu1 %v2736_v1  ;;  %v285_v28 = vld [vmem:[#allocation4 + $0x58] sm:$0xff]  ;;  %v284_v29 = vld [vmem:[#allocation4 + $0x50] sm:$0xff]  ;;  %v283_v30 = vld [vmem:[#allocation4 + $0x48] sm:$0xff] }
  0x26   :  { %184 = vmatpush1.msra.mxu0 %v123_v13  ;;  %336 = vmatpush1.msra.mxu1 %v288_v25  ;;  %v282_v31 = vld [vmem:[#allocation4 + $0x40] sm:$0xff]  ;;  %v281_v32 = vld [vmem:[#allocation4 + $0x38] sm:$0xff]  ;;  %v280_v33 = vld [vmem:[#allocation4 + $0x30] sm:$0xff] }
  0x27   :  { %80 = vperm.xlu0 %2555, %v61_v11   ;;  %83 = vperm.xlu1 %2556, %v62_v12   ;;  %v279_v34 = vld [vmem:[#allocation4 + $0x28] sm:$0xff]  ;;  %v278_v35 = vld [vmem:[#allocation4 + $0x20] sm:$0xff]  ;;  %v277_v36 = vld [vmem:[#allocation4 + $0x18] sm:$0xff] }
  0x28   :  { %185 = vmatprep.subr.mxu0 %v122_v14  ;;  %337 = vmatprep.subr.mxu1 %v2736_v1  ;;  %v276_v37 = vld [vmem:[#allocation4 + $0x10] sm:$0xff]  ;;  %v275_v38 = vld [vmem:[#allocation4 + $0x8] sm:$0xff]  ;;  %v274_v39 = vld [vmem:[#allocation4] sm:$0xff] }
  0x29   :  { %186 = vmatpush1.msra.mxu0 %v121_v15  ;;  %338 = vmatpush1.msra.mxu1 %v287_v26  ;;  %v292_v40 = vld [vmem:[#allocation4 + $0x90] sm:$0x3f]  ;;  %v2839_v45 = vld [vmem:[%s3278_s3 + $0x18] sm:$0xff]  ;;  %v2846_v47 = vld [vmem:[%s3278_s3 + $0x10] sm:$0xff] }
  0x2a   :  { %187 = vmatprep.subr.mxu0 %v120_v17  ;;  %339 = vmatprep.subr.mxu1 %v2736_v1  ;;  %v2854_v49 = vld [vmem:[%s3278_s3 + $0x8] sm:$0xff]  ;;  %v2863_v52 = vld [vmem:[%s3278_s3] sm:$0xff]  ;;  %v291_v63 = vld [vmem:[#allocation4 + $0x88] sm:$0xff] }
  0x2b   :  { %86 = vperm.xlu0 %2555, %v63_v16   ;;  %188 = vmatpush1.msra.mxu0 %v119_v18  ;;  %v290_v0 = vld [vmem:[#allocation4 + $0x80] sm:$0xff] }
  0x2c   :  { %189 = vmatprep.subr.mxu0 %v118_v19  ;;  %89 = vperm.xlu1 %2556, %v64_v23  }
  0x2d   :  { %190 = vmatpush1.msra.mxu0 %v117_v20  ;;  %340 = vmatpush1.msra.mxu1 %v286_v27  ;;  %v2206_v20 = vld [vmem:[%s3279_s4] ss:$0 sm:$0xff]  ;;  %s2738_s4 = smov 64  }
  0x2e   :  { %191 = vmatprep.subr.mxu0 %v116_v21  ;;  %341 = vmatprep.subr.mxu1 %v2736_v1 }
  0x2f   :  { %192 = vmatpush1.msra.mxu0 %v115_v22  ;;  %342 = vmatpush1.msra.mxu1 %v285_v28 }
  0x30   :  { %2347 = vmatprep.subr.mxu0 %v2736_v1  ;;  %343 = vmatprep.subr.mxu1 %v2736_v1 }
  0x31   :  { %344 = vmatpush1.msra.mxu1 %v284_v29 }
  0x32   :  { %345 = vmatprep.subr.mxu1 %v2736_v1 }
  0x33   :  { %346 = vmatpush1.msra.mxu1 %v283_v30 }
  0x34   :  { %347 = vmatprep.subr.mxu1 %v2736_v1 }
  0x35   :  { %348 = vmatpush1.msra.mxu1 %v282_v31 }
  0x36   :  { %349 = vmatprep.subr.mxu1 %v2736_v1 }
  0x37   :  { %350 = vmatpush1.msra.mxu1 %v281_v32 }
  0x38   :  { %351 = vmatprep.subr.mxu1 %v2736_v1 }
  0x39   :  { %352 = vmatpush1.msra.mxu1 %v280_v33 }
  0x3a   :  { %353 = vmatprep.subr.mxu1 %v2736_v1 }
  0x3b   :  { %354 = vmatpush1.msra.mxu1 %v279_v34 }
  0x3c   :  { %355 = vmatprep.subr.mxu1 %v2736_v1 }
  0x3d   :  { %356 = vmatpush1.msra.mxu1 %v278_v35 }
  0x3e   :  { %357 = vmatprep.subr.mxu1 %v2736_v1 }
  0x3f   :  { %358 = vmatpush1.msra.mxu1 %v277_v36 }
  0x40   :  { %359 = vmatprep.subr.mxu1 %v2736_v1 }
  0x41   :  { %360 = vmatpush1.msra.mxu1 %v276_v37 }
  0x42   :  { %361 = vmatprep.subr.mxu1 %v2736_v1 }
  0x43   :  { %362 = vmatpush1.msra.mxu1 %v275_v38 }
  0x44   :  { %363 = vmatprep.subr.mxu1 %v2736_v1 }
  0x45   :  { %364 = vmatpush1.msra.mxu1 %v274_v39 }
  0x46   :  { %391 = vmatprep.subr.mxu1 %v2736_v1 }
  0x47   :  { %2207 = vmatpush2.msk.msra.mxu1 %vm329_vm1, %v292_v40 }
  0x48   :  { %393 = vmatprep.subr.mxu1 %v2736_v1 }
  0x49   :  { %394 = vmatpush2.msra.mxu1 %v291_v63 }
  0x4a   :  { %395 = vmatprep.subr.mxu1 %v2736_v1 }
  0x4b   :  { %396 = vmatpush2.msra.mxu1 %v290_v0 }
  0x4c   :  { %2391 = vmatprep.subr.mxu1 %v2736_v1 }
  0x9a   :  { %v69_v43 = vpop.permute.xlu0 %68  ;;  %v75_v44 = vpop.permute.xlu1 %74 }
  0x9b   :  { %vm91_vm3 = vcmp.eq.s32.totalorder %v69_v43, %v66_v42  ;;  %vm93_vm5 = vcmp.eq.s32.totalorder %v75_v44, %v66_v42 }
  0x9c   :  { %v2188_v46 = vsel %vm91_vm3, 1.0, %v2736_v1  ;;  %v2190_v53 = vsel %vm93_vm5, 1.0, %v2736_v1 }
  0x9d   :  { %2198 = vmatmul.mubr.msk.f32.vlgmr.msra.gmra.mxu0 %vm129_vm2, %v2188_v46 }
  0x9e   :  { %v72_v48 = vpop.permute.xlu0 %71  ;;  %231 = vmatprep.mubr.f32.mxu0 %v2736_v1  ;;  %2348 = vmatpush3.msra.mxu0 %v2839_v45  ;;  %v78_v51 = vpop.permute.xlu1 %77 }
  0x9f   :  { %vm92_vm4 = vcmp.eq.s32.totalorder %v72_v48, %v66_v42  ;;  %2349 = vmatprep.subr.mxu0 %v2736_v1  ;;  %vm94_vm6 = vcmp.eq.s32.totalorder %v78_v51, %v66_v42 }
  0xa0   :  { %v2189_v50 = vsel %vm92_vm4, 1.0, %v2736_v1  ;;  %2350 = vmatpush3.msra.mxu0 %v2846_v47  ;;  %v2191_v55 = vsel %vm94_vm6, 1.0, %v2736_v1 }
  0xa1   :  { %2199 = vmatmul.mubr.msk.f32.gmra.mxu0 %vm129_vm2, %v2189_v50  ;;  %2351 = vmatprep.subr.mxu0 %v2736_v1 }
  0xa2   :  { %237 = vmatprep.mubr.f32.mxu0 %v2736_v1  ;;  %2352 = vmatpush3.msra.mxu0 %v2854_v49  ;;  %v81_v54 = vpop.permute.xlu0 %80  ;;  %v84_v56 = vpop.permute.xlu1 %83 }
  0xa3   :  { %2353 = vmatprep.subr.mxu0 %v2736_v1  ;;  %vm95_vm7 = vcmp.eq.s32.totalorder %v81_v54, %v66_v42  ;;  %vm96_vm8 = vcmp.eq.s32.totalorder %v84_v56, %v66_v42 }
  0xa4   :  { %2354 = vmatpush3.msra.mxu0 %v2863_v52  ;;  %v2192_v57 = vsel %vm95_vm7, 1.0, %v2736_v1  ;;  %v2193_v59 = vsel %vm96_vm8, 1.0, %v2736_v1 }
  0xa5   :  { %2200 = vmatmul.mubr.msk.f32.gmra.mxu0 %vm129_vm2, %v2190_v53  ;;  %2358 = vmatprep.subr.mxu0 %v2736_v1 }
  0xa6   :  { %243 = vmatprep.mubr.f32.mxu0 %v2736_v1  ;;  %v87_v58 = vpop.permute.xlu0 %86 }
  0xa7   :  { %vm97_vm9 = vcmp.eq.s32.totalorder %v87_v58, %v66_v42  ;;  %v90_v60 = vpop.permute.xlu1 %89 }
  0xa8   :  { %vm98_vm10 = vcmp.eq.s32.totalorder %v90_v60, %v66_v42  ;;  %v2194_v61 = vsel %vm97_vm9, 1.0, %v2736_v1 }
  0xa9   :  { %2201 = vmatmul.mubr.msk.f32.gmra.mxu0 %vm129_vm2, %v2191_v55  ;;  %v2195_v62 = vsel %vm98_vm10, 1.0, %v2736_v1 }
  0xaa   :  { %249 = vmatprep.mubr.f32.mxu0 %v2736_v1 }
  0xad   :  { %2202 = vmatmul.mubr.msk.f32.gmra.mxu0 %vm129_vm2, %v2192_v57 }
  0xae   :  { %255 = vmatprep.mubr.f32.mxu0 %v2736_v1 }
  0xb1   :  { %2203 = vmatmul.mubr.msk.f32.gmra.mxu0 %vm129_vm2, %v2193_v59 }
  0xb2   :  { %261 = vmatprep.mubr.f32.mxu0 %v2736_v1 }
  0xb5   :  { %2204 = vmatmul.mubr.msk.f32.gmra.mxu0 %vm129_vm2, %v2194_v61 }
  0xb6   :  { %267 = vmatprep.mubr.f32.mxu0 %v2736_v1 }
  0xb9   :  { %2205 = vmatmul.mubr.msk.f32.gmra.mxu0 %vm129_vm2, %v2195_v62 }
  0xba   :  { %2355 = vmatprep.mubr.msk.f32.mxu0 %vm2737_vm11, %v2736_v1 }
  0xbd   :  { %2356 = vmatmul.mubr.f32.vlgmr.msra.gmra.mxu0 %v2736_v1 }
  0xbe   :  { %2359 = vmatpush3.msra.mxu0 %v2839_v45  ;;  %2366 = vmatprep.mubr.msk.f32.mxu0 %vm2737_vm11, %v2736_v1 }
  0xbf   :  { %2360 = vmatprep.subr.mxu0 %v2736_v1 }
  0xc0   :  { %2361 = vmatpush3.msra.mxu0 %v2846_v47 }
  0xc1   :  { %2362 = vmatprep.subr.mxu0 %v2736_v1 }
  0xc2   :  { %2363 = vmatpush3.msra.mxu0 %v2854_v49 }
  0xc3   :  { %2364 = vmatprep.subr.mxu0 %v2736_v1 }
  0xc4   :  { %2365 = vmatpush3.msra.mxu0 %v2863_v52 }
  0xc5   :  { %2369 = vmatprep.subr.mxu0 %v2736_v1 }
 0x15d   :  { %v227_v2 = vpop.f32.mrf.mxu0 }
 0x15f   :  { %v229_v3 = vpop.f32.mrf.mxu0 }
 0x160   :  { %2208 = vmatprep.mubr.msk.f32.mxu1 %vm304_vm12, %v229_v3 }
 0x161   :  { %v233_v4 = vpop.f32.mrf.mxu0  ;;  %398 = vmatmul.mubr.f32.vlgmr.msra.gmra.mxu1 %v227_v2 }
 0x162   :  { %2392 = vmatpush3.msra.mxu1 %v2839_v45 }
 0x163   :  { %v235_v5 = vpop.f32.mrf.mxu0  ;;  %2393 = vmatprep.subr.mxu1 %v2736_v1 }
 0x164   :  { %2209 = vmatprep.mubr.msk.f32.mxu1 %vm304_vm12, %v235_v5  ;;  %2394 = vmatpush3.msra.mxu1 %v2846_v47 }
 0x165   :  { %v239_v6 = vpop.f32.mrf.mxu0  ;;  %403 = vmatmul.mubr.f32.gmra.mxu1 %v233_v4  ;;  %2395 = vmatprep.subr.mxu1 %v2736_v1 }
 0x166   :  { %2396 = vmatpush3.msra.mxu1 %v2854_v49 }
 0x167   :  { %v241_v7 = vpop.f32.mrf.mxu0  ;;  %2397 = vmatprep.subr.mxu1 %v2736_v1 }
 0x168   :  { %2210 = vmatprep.mubr.msk.f32.mxu1 %vm304_vm12, %v241_v7  ;;  %2398 = vmatpush3.msra.mxu1 %v2863_v52 }
 0x169   :  { %v245_v8 = vpop.f32.mrf.mxu0  ;;  %408 = vmatmul.mubr.f32.gmra.mxu1 %v239_v6  ;;  %2413 = vmatprep.subr.mxu1 %v2736_v1 }
 0x16b   :  { %v247_v9 = vpop.f32.mrf.mxu0 }
 0x16c   :  { %2211 = vmatprep.mubr.msk.f32.mxu1 %vm304_vm12, %v247_v9 }
 0x16d   :  { %v251_v10 = vpop.f32.mrf.mxu0  ;;  %413 = vmatmul.mubr.f32.gmra.mxu1 %v245_v8 }
 0x16f   :  { %v253_v11 = vpop.f32.mrf.mxu0 }
 0x170   :  { %2212 = vmatprep.mubr.msk.f32.mxu1 %vm304_vm12, %v253_v11 }
 0x171   :  { %v257_v12 = vpop.f32.mrf.mxu0  ;;  %418 = vmatmul.mubr.f32.gmra.mxu1 %v251_v10 }
 0x173   :  { %v259_v13 = vpop.f32.mrf.mxu0 }
 0x174   :  { %2213 = vmatprep.mubr.msk.f32.mxu1 %vm304_vm12, %v259_v13 }
 0x175   :  { %v263_v14 = vpop.f32.mrf.mxu0  ;;  %423 = vmatmul.mubr.f32.gmra.mxu1 %v257_v12 }
 0x177   :  { %v265_v15 = vpop.f32.mrf.mxu0 }
 0x178   :  { %2214 = vmatprep.mubr.msk.f32.mxu1 %vm304_vm12, %v265_v15 }
 0x179   :  { %428 = vmatmul.mubr.f32.gmra.mxu1 %v263_v14  ;;  %v269_v16 = vpop.f32.mrf.mxu0 }
 0x17b   :  { %v271_v17 = vpop.f32.mrf.mxu0 }
 0x17c   :  { %2215 = vmatprep.mubr.msk.f32.mxu1 %vm304_vm12, %v271_v17 }
 0x17d   :  { %433 = vmatmul.mubr.f32.gmra.mxu1 %v269_v16  ;;  %v508_v18 = vpop.f32.mrf.mxu0 }
 0x17e   :  { %2399 = vmatprep.mubr.msk.f32.mxu1 %vm2737_vm11, %v2736_v1 }
 0x17f   :  { %v2357_v19 = vpop.f32.mrf.mxu0 }
 0x221   :  { %v399_v21 = vpop.f32.mrf.mxu1 }
 0x222   :  { %v400_v22 = vadd.f32 %v2206_v20, %v399_v21 }
 0x223   :  { %v401_v23 = vpop.f32.mrf.mxu1 }
 0x224   :  { %v512_v24 = vadd.f32 %v508_v18, %v400_v22 }
 0x225   :  { %v404_v25 = vpop.f32.mrf.mxu1 }
 0x226   :  { %2557 = vtanh.f32 %v512_v24  ;;  %v405_v26 = vadd.f32 %v2206_v20, %v404_v25  ;;  %v2216_v50 = vmul.f32 -1.442695, %v512_v24 }
 0x227   :  { %v406_v27 = vpop.f32.mrf.mxu1 }
 0x228   :  { %2559 = vpow2.f32 %v2216_v50 }
 0x229   :  { %v409_v28 = vpop.f32.mrf.mxu1 }
 0x22a   :  { %v2923_v29 = vadd.f32 %v2206_v20, %v409_v28 }
 0x22b   :  { %v411_v30 = vpop.f32.mrf.mxu1 }
 0x22d   :  { %v414_v31 = vpop.f32.mrf.mxu1 }
 0x22e   :  { %v2925_v32 = vadd.f32 %v2206_v20, %v414_v31 }
 0x22f   :  { %v416_v33 = vpop.f32.mrf.mxu1 }
 0x231   :  { %v419_v34 = vpop.f32.mrf.mxu1 }
 0x232   :  { %v2927_v35 = vadd.f32 %v2206_v20, %v419_v34 }
 0x233   :  { %v2558_v36 = vpop.eup %2557  ;;  %v421_v37 = vpop.f32.mrf.mxu1 }
 0x234   :  { %522 = vrot.lane.b32.xlu0 %v2558_v36, %s2738_s4 }
 0x235   :  { %v424_v38 = vpop.f32.mrf.mxu1  ;;  %v2560_v51 = vpop.eup %2559 }
 0x236   :  { %v2930_v39 = vadd.f32 %v2206_v20, %v424_v38  ;;  %v516_v53 = vadd.f32 1.0, %v2560_v51 }
 0x237   :  { %v426_v40 = vpop.f32.mrf.mxu1 }
 0x238   :  { %2561 = vrcp.f32 %v516_v53 }
 0x239   :  { %v429_v41 = vpop.f32.mrf.mxu1 }
 0x23a   :  { %v2932_v42 = vadd.f32 %v2206_v20, %v429_v41 }
 0x23b   :  { %v431_v43 = vpop.f32.mrf.mxu1 }
 0x23d   :  { %v434_v44 = vpop.f32.mrf.mxu1 }
 0x23e   :  { %v2934_v46 = vadd.f32 %v2206_v20, %v434_v44 }
 0x23f   :  { %v436_v48 = vpop.f32.mrf.mxu1 }
 0x245   :  { %v2562_v54 = vpop.eup %2561 }
 0x246   :  { %v520_v57 = vmul.f32 0.0, %v2562_v54 }
 0x2a6   :  { %v523_v55 = vpop.permute.xlu0 %522 }
 0x2a7   :  { %v525_v56 = vmul.f32 %v2562_v54, %v523_v55 }
 0x2a9   :  { %527 = vrot.lane.b32.xlu1 %v525_v56, %s2739_s1 }
 0x31b   :  { %v528_v58 = vpop.permute.xlu1 %527 }
 0x31c   :  { %v530_v59 = vadd.f32 %v528_v58, %v520_v57 }
 0x31e   :  { %2563 = vtanh.f32 %v530_v59 }
 0x32b   :  { %v2564_v60 = vpop.eup %2563 }
 0x32c   :  { %533 = vrot.lane.b32.xlu0 %v2564_v60, %s2738_s4 }
 0x39e   :  { %v534_v61 = vpop.permute.xlu0 %533 }
 0x39f   :  { %v536_v62 = vmul.f32 %v2562_v54, %v534_v61 }
 0x3a1   :  { %538 = vrot.lane.b32.xlu1 %v536_v62, %s2739_s1 }
 0x413   :  { %v2939_v63 = vpop.permute.xlu1 %538 }
 0x414   :  { %2367 = vmatmul.mubr.msk.f32.vlgmr.msra.gmra.mxu0 %vm438_vm13, %v2939_v63 }
 0x415   :  { %2370 = vmatpush3.msra.mxu0 %v2839_v45  ;;  %2377 = vmatprep.mubr.msk.f32.mxu0 %vm2737_vm11, %v2736_v1 }
 0x416   :  { %2371 = vmatprep.subr.mxu0 %v2736_v1 }
 0x417   :  { %2372 = vmatpush3.msra.mxu0 %v2846_v47 }
 0x418   :  { %2373 = vmatprep.subr.mxu0 %v2736_v1 }
 0x419   :  { %2374 = vmatpush3.msra.mxu0 %v2854_v49 }
 0x41a   :  { %2375 = vmatprep.subr.mxu0 %v2736_v1 }
 0x41b   :  { %2376 = vmatpush3.msra.mxu0 %v2863_v52 }
 0x41c   :  { %2380 = vmatprep.subr.mxu0 %v2736_v1 }
 0x4d4   :  { %v608_v0 = vpop.f32.mrf.mxu0 }
 0x4d5   :  { %v612_v2 = vadd.f32 %v608_v0, %v405_v26 }
 0x4d6   :  { %v2368_v3 = vpop.f32.mrf.mxu0 }
 0x4d7   :  { %2565 = vtanh.f32 %v612_v2  ;;  %v2218_v5 = vmul.f32 -1.442695, %v612_v2 }
 0x4d9   :  { %2567 = vpow2.f32 %v2218_v5 }
 0x4e4   :  { %v2566_v4 = vpop.eup %2565 }
 0x4e5   :  { %622 = vrot.lane.b32.xlu0 %v2566_v4, %s2738_s4 }
 0x4e6   :  { %v2568_v6 = vpop.eup %2567 }
 0x4e7   :  { %v616_v7 = vadd.f32 1.0, %v2568_v6 }
 0x4e9   :  { %2569 = vrcp.f32 %v616_v7 }
 0x4f6   :  { %v2570_v8 = vpop.eup %2569 }
 0x4f7   :  { %v620_v11 = vmul.f32 %v2570_v8, %v530_v59 }
 0x557   :  { %v623_v9 = vpop.permute.xlu0 %622 }
 0x558   :  { %v625_v10 = vmul.f32 %v2570_v8, %v623_v9 }
 0x55a   :  { %627 = vrot.lane.b32.xlu1 %v625_v10, %s2739_s1 }
 0x5cc   :  { %v628_v12 = vpop.permute.xlu1 %627 }
 0x5cd   :  { %v630_v13 = vadd.f32 %v628_v12, %v620_v11 }
 0x5cf   :  { %2571 = vtanh.f32 %v630_v13 }
 0x5dc   :  { %v2572_v14 = vpop.eup %2571 }
 0x5dd   :  { %633 = vrot.lane.b32.xlu0 %v2572_v14, %s2738_s4 }
 0x64f   :  { %v634_v15 = vpop.permute.xlu0 %633 }
 0x650   :  { %v636_v16 = vmul.f32 %v2570_v8, %v634_v15 }
 0x652   :  { %638 = vrot.lane.b32.xlu1 %v636_v16, %s2739_s1 }
 0x6c4   :  { %v2957_v17 = vpop.permute.xlu1 %638 }
 0x6c5   :  { %2378 = vmatmul.mubr.msk.f32.vlgmr.msra.gmra.mxu0 %vm438_vm13, %v2957_v17 }
 0x6c6   :  { %2381 = vmatpush3.msra.mxu0 %v2839_v45  ;;  %2388 = vmatprep.mubr.msk.f32.mxu0 %vm2737_vm11, %v2736_v1 }
 0x6c7   :  { %2382 = vmatprep.subr.mxu0 %v2736_v1 }
 0x6c8   :  { %2383 = vmatpush3.msra.mxu0 %v2846_v47 }
 0x6c9   :  { %2384 = vmatprep.subr.mxu0 %v2736_v1 }
 0x6ca   :  { %2385 = vmatpush3.msra.mxu0 %v2854_v49 }
 0x6cb   :  { %2386 = vmatprep.subr.mxu0 %v2736_v1 }
 0x6cc   :  { %2387 = vmatpush3.msra.mxu0 %v2863_v52 }
 0x6cd   :  { %2402 = vmatprep.subr.mxu0 %v2736_v1 }
 0x785   :  { %v708_v18 = vpop.f32.mrf.mxu0 }
 0x786   :  { %v712_v19 = vadd.f32 %v708_v18, %v2923_v29 }
 0x787   :  { %v2379_v20 = vpop.f32.mrf.mxu0 }
 0x788   :  { %2573 = vtanh.f32 %v712_v19  ;;  %v2220_v22 = vmul.f32 -1.442695, %v712_v19 }
 0x78a   :  { %2575 = vpow2.f32 %v2220_v22 }
 0x795   :  { %v2574_v21 = vpop.eup %2573 }
 0x796   :  { %722 = vrot.lane.b32.xlu0 %v2574_v21, %s2738_s4 }
 0x797   :  { %v2576_v23 = vpop.eup %2575 }
 0x798   :  { %v716_v24 = vadd.f32 1.0, %v2576_v23 }
 0x79a   :  { %2577 = vrcp.f32 %v716_v24 }
 0x7a7   :  { %v2578_v25 = vpop.eup %2577 }
 0x7a8   :  { %v720_v28 = vmul.f32 %v2578_v25, %v630_v13 }
 0x808   :  { %v723_v26 = vpop.permute.xlu0 %722 }
 0x809   :  { %v725_v27 = vmul.f32 %v2578_v25, %v723_v26 }
 0x80b   :  { %727 = vrot.lane.b32.xlu1 %v725_v27, %s2739_s1 }
 0x87d   :  { %v728_v30 = vpop.permute.xlu1 %727 }
 0x87e   :  { %v730_v31 = vadd.f32 %v728_v30, %v720_v28  ;;  %v1239_v28 = vld [vmem:[%s3280_s5 + $0x10] sm:$0xff]  ;;  %v1238_v30 = vld [vmem:[%s3280_s5 + $0x8] sm:$0xff] }
 0x880   :  { %2579 = vtanh.f32 %v730_v31 }
 0x88d   :  { %v2580_v29 = vpop.eup %2579 }
 0x88e   :  { %733 = vrot.lane.b32.xlu0 %v2580_v29, %s2738_s4 }
 0x900   :  { %v734_v33 = vpop.permute.xlu0 %733 }
 0x901   :  { %v736_v34 = vmul.f32 %v2578_v25, %v734_v33 }
 0x903   :  { %738 = vrot.lane.b32.xlu1 %v736_v34, %s2739_s1 }
 0x975   :  { %v2976_v36 = vpop.permute.xlu1 %738 }
 0x976   :  { %2389 = vmatmul.mubr.msk.f32.vlgmr.msra.gmra.mxu0 %vm438_vm13, %v2976_v36 }
 0x977   :  { %2403 = vmatpush3.msra.mxu0 %v2839_v45  ;;  %2410 = vmatprep.mubr.msk.f32.mxu0 %vm2737_vm11, %v2736_v1 }
 0x978   :  { %2404 = vmatprep.subr.mxu0 %v2736_v1 }
 0x979   :  { %2405 = vmatpush3.msra.mxu0 %v2846_v47 }
 0x97a   :  { %2406 = vmatprep.subr.mxu0 %v2736_v1 }
 0x97b   :  { %2407 = vmatpush3.msra.mxu0 %v2854_v49 }
 0x97c   :  { %2408 = vmatprep.subr.mxu0 %v2736_v1 }
 0x97d   :  { %2409 = vmatpush3.msra.mxu0 %v2863_v52 }
 0x97e   :  { %2424 = vmatprep.subr.mxu0 %v2736_v1 }
 0xa36   :  { %v808_v37 = vpop.f32.mrf.mxu0 }
 0xa37   :  { %v812_v38 = vadd.f32 %v808_v37, %v2925_v32 }
 0xa38   :  { %v2390_v40 = vpop.f32.mrf.mxu0 }
 0xa39   :  { %2581 = vtanh.f32 %v812_v38  ;;  %v2222_v43 = vmul.f32 -1.442695, %v812_v38 }
 0xa3b   :  { %2583 = vpow2.f32 %v2222_v43 }
 0xa46   :  { %v2582_v41 = vpop.eup %2581 }
 0xa47   :  { %822 = vrot.lane.b32.xlu0 %v2582_v41, %s2738_s4 }
 0xa48   :  { %v2584_v44 = vpop.eup %2583 }
 0xa49   :  { %v816_v48 = vadd.f32 1.0, %v2584_v44 }
 0xa4b   :  { %2585 = vrcp.f32 %v816_v48 }
 0xa58   :  { %v2586_v50 = vpop.eup %2585 }
 0xa59   :  { %v820_v54 = vmul.f32 %v2586_v50, %v730_v31  ;;  %v1237_v31 = vld [vmem:[%s3280_s5] sm:$0xff] }
 0xab9   :  { %v823_v51 = vpop.permute.xlu0 %822 }
 0xaba   :  { %v825_v53 = vmul.f32 %v2586_v50, %v823_v51  ;;  %v3069_v51 = vld [vmem:[%s3281_s6 + $0x10] sm:$0xff] }
 0xabc   :  { %827 = vrot.lane.b32.xlu1 %v825_v53, %s2739_s1  ;;  %v3076_v53 = vld [vmem:[%s3281_s6 + $0x8] sm:$0xff] }
 0xb2e   :  { %v828_v55 = vpop.permute.xlu1 %827 }
 0xb2f   :  { %v830_v56 = vadd.f32 %v828_v55, %v820_v54  ;;  %v3083_v54 = vld [vmem:[%s3281_s6] sm:$0xff] }
 0xb31   :  { %2587 = vtanh.f32 %v830_v56 }
 0xb3e   :  { %v2588_v32 = vpop.eup %2587 }
 0xb3f   :  { %833 = vrot.lane.b32.xlu0 %v2588_v32, %s2738_s4 }
 0xbb1   :  { %v834_v57 = vpop.permute.xlu0 %833 }
 0xbb2   :  { %v836_v58 = vmul.f32 %v2586_v50, %v834_v57  ;;  %v3063_v50 = vld [vmem:[%s3281_s6 + $0x18] sm:$0xff] }
 0xbb4   :  { %838 = vrot.lane.b32.xlu1 %v836_v58, %s2739_s1 }
 0xc26   :  { %v2995_v59 = vpop.permute.xlu1 %838 }
 0xc27   :  { %2400 = vmatmul.mubr.msk.f32.vlgmr.msra.gmra.mxu1 %vm438_vm13, %v2995_v59 }
 0xc28   :  { %2414 = vmatpush3.msra.mxu1 %v2839_v45  ;;  %2421 = vmatprep.mubr.msk.f32.mxu1 %vm2737_vm11, %v2736_v1 }
 0xc29   :  { %2415 = vmatprep.subr.mxu1 %v2736_v1 }
 0xc2a   :  { %2416 = vmatpush3.msra.mxu1 %v2846_v47 }
 0xc2b   :  { %2417 = vmatprep.subr.mxu1 %v2736_v1 }
 0xc2c   :  { %2418 = vmatpush3.msra.mxu1 %v2854_v49 }
 0xc2d   :  { %2419 = vmatprep.subr.mxu1 %v2736_v1 }
 0xc2e   :  { %2420 = vmatpush3.msra.mxu1 %v2863_v52 }
 0xce7   :  { %v908_v60 = vpop.f32.mrf.mxu1 }
 0xce8   :  { %v912_v61 = vadd.f32 %v908_v60, %v2927_v35 }
 0xce9   :  { %v2401_v62 = vpop.f32.mrf.mxu1 }
 0xcea   :  { %2589 = vtanh.f32 %v912_v61  ;;  %v2224_v2 = vmul.f32 -1.442695, %v912_v61  ;;  %v3118_v62 = vld [vmem:[%s3282_s7] ss:$0 sm:$0xff] }
 0xcec   :  { %2591 = vpow2.f32 %v2224_v2 }
 0xcf7   :  { %v2590_v0 = vpop.eup %2589 }
 0xcf8   :  { %922 = vrot.lane.b32.xlu0 %v2590_v0, %s2738_s4 }
 0xcf9   :  { %v2592_v3 = vpop.eup %2591 }
 0xcfa   :  { %v916_v4 = vadd.f32 1.0, %v2592_v3 }
 0xcfc   :  { %2593 = vrcp.f32 %v916_v4 }
 0xd09   :  { %v2594_v5 = vpop.eup %2593 }
 0xd0a   :  { %v920_v8 = vmul.f32 %v2594_v5, %v830_v56 }
 0xd6a   :  { %v923_v6 = vpop.permute.xlu0 %922 }
 0xd6b   :  { %v925_v7 = vmul.f32 %v2594_v5, %v923_v6 }
 0xd6d   :  { %927 = vrot.lane.b32.xlu1 %v925_v7, %s2739_s1 }
 0xddf   :  { %v928_v9 = vpop.permute.xlu1 %927 }
 0xde0   :  { %v930_v10 = vadd.f32 %v928_v9, %v920_v8 }
 0xde2   :  { %2595 = vtanh.f32 %v930_v10 }
 0xdef   :  { %v2596_v35 = vpop.eup %2595 }
 0xdf0   :  { %933 = vrot.lane.b32.xlu0 %v2596_v35, %s2738_s4 }
 0xe62   :  { %v934_v11 = vpop.permute.xlu0 %933 }
 0xe63   :  { %v936_v12 = vmul.f32 %v2594_v5, %v934_v11 }
 0xe65   :  { %938 = vrot.lane.b32.xlu1 %v936_v12, %s2739_s1 }
 0xed7   :  { %v939_v13 = vpop.permute.xlu1 %938 }
 0xed8   :  { %2411 = vmatmul.mubr.msk.f32.vlgmr.msra.gmra.mxu0 %vm438_vm13, %v939_v13 }
 0xed9   :  { %2425 = vmatpush3.msra.mxu0 %v2839_v45  ;;  %2432 = vmatprep.mubr.msk.f32.mxu0 %vm2737_vm11, %v2736_v1 }
 0xeda   :  { %2426 = vmatprep.subr.mxu0 %v2736_v1 }
 0xedb   :  { %2427 = vmatpush3.msra.mxu0 %v2846_v47 }
 0xedc   :  { %2428 = vmatprep.subr.mxu0 %v2736_v1 }
 0xedd   :  { %2429 = vmatpush3.msra.mxu0 %v2854_v49 }
 0xede   :  { %2430 = vmatprep.subr.mxu0 %v2736_v1 }
 0xedf   :  { %2431 = vmatpush3.msra.mxu0 %v2863_v52 }
 0xee0   :  { %2455 = vmatprep.subr.mxu0 %v2736_v1 }
 0xf98   :  { %v1008_v14 = vpop.f32.mrf.mxu0 }
 0xf99   :  { %v1012_v45 = vadd.f32 %v1008_v14, %v2930_v39  ;;  %v1240_v39 = vld [vmem:[%s3280_s5 + $0x18] sm:$0xff] }
 0xf9a   :  { %v2412_v15 = vpop.f32.mrf.mxu0  ;;  %2435 = vmatprep.subr.mxu1 %v1240_v39 }
 0xf9b   :  { %2597 = vtanh.f32 %v1012_v45  ;;  %v2226_v18 = vmul.f32 -1.442695, %v1012_v45 }
 0xf9d   :  { %2599 = vpow2.f32 %v2226_v18 }
 0xfa8   :  { %v2598_v16 = vpop.eup %2597 }
 0xfa9   :  { %1022 = vrot.lane.b32.xlu0 %v2598_v16, %s2738_s4 }
 0xfaa   :  { %v2600_v47 = vpop.eup %2599 }
 0xfab   :  { %v1016_v19 = vadd.f32 1.0, %v2600_v47 }
 0xfad   :  { %2601 = vrcp.f32 %v1016_v19 }
 0xfba   :  { %v2602_v49 = vpop.eup %2601 }
 0xfbb   :  { %v1020_v52 = vmul.f32 %v2602_v49, %v930_v10 }
0x101b   :  { %v1023_v20 = vpop.permute.xlu0 %1022 }
0x101c   :  { %v1025_v21 = vmul.f32 %v2602_v49, %v1023_v20 }
0x101e   :  { %1027 = vrot.lane.b32.xlu1 %v1025_v21, %s2739_s1 }
0x1090   :  { %v1028_v22 = vpop.permute.xlu1 %1027 }
0x1091   :  { %v1030_v23 = vadd.f32 %v1028_v22, %v1020_v52 }
0x1093   :  { %2603 = vtanh.f32 %v1030_v23 }
0x10a0   :  { %v2604_v24 = vpop.eup %2603 }
0x10a1   :  { %1033 = vrot.lane.b32.xlu0 %v2604_v24, %s2738_s4 }
0x1113   :  { %v1034_v25 = vpop.permute.xlu0 %1033 }
0x1114   :  { %v1036_v26 = vmul.f32 %v2602_v49, %v1034_v25 }
0x1116   :  { %1038 = vrot.lane.b32.xlu1 %v1036_v26, %s2739_s1 }
0x1188   :  { %v1039_v27 = vpop.permute.xlu1 %1038 }
0x1189   :  { %2422 = vmatmul.mubr.msk.f32.vlgmr.msra.gmra.mxu1 %vm438_vm13, %v1039_v27 }
0x118a   :  { %2436 = vmatpush3.msra.mxu1 %v1240_v39  ;;  %2443 = vmatprep.mubr.msk.f32.mxu1 %vm438_vm13, %v2939_v63 }
0x118b   :  { %2437 = vmatprep.subr.mxu1 %v1239_v28 }
0x118c   :  { %2438 = vmatpush3.msra.mxu1 %v1239_v28 }
0x118d   :  { %2439 = vmatprep.subr.mxu1 %v1238_v30 }
0x118e   :  { %2440 = vmatpush3.msra.mxu1 %v1238_v30 }
0x118f   :  { %2441 = vmatprep.subr.mxu1 %v1237_v31 }
0x1190   :  { %2442 = vmatpush3.msra.mxu1 %v1237_v31 }
0x1191   :  { %2444 = vmatmul.mubr.msk.f32.vlgmr.msra.gmra.mxu1 %vm438_vm13, %v2957_v17  ;;  %2477 = vmatprep.subr.mxu1 %v2736_v1 }
0x1192   :  { %2446 = vmatprep.mubr.msk.f32.mxu1 %vm438_vm13, %v2976_v36  ;;  %2478 = vmatpush3.msra.mxu1 %v3063_v50 }
0x1193   :  { %2479 = vmatprep.subr.mxu1 %v2736_v1 }
0x1194   :  { %2480 = vmatpush3.msra.mxu1 %v3069_v51 }
0x1195   :  { %2447 = vmatmul.mubr.msk.f32.gmra.mxu1 %vm438_vm13, %v2995_v59  ;;  %2481 = vmatprep.subr.mxu1 %v2736_v1 }
0x1196   :  { %2449 = vmatprep.mubr.msk.f32.mxu1 %vm438_vm13, %v939_v13  ;;  %2482 = vmatpush3.msra.mxu1 %v3076_v53 }
0x1197   :  { %2483 = vmatprep.subr.mxu1 %v2736_v1 }
0x1198   :  { %2484 = vmatpush3.msra.mxu1 %v3083_v54 }
0x1199   :  { %2450 = vmatmul.mubr.msk.f32.gmra.mxu1 %vm438_vm13, %v1039_v27  ;;  %2499 = vmatprep.subr.mxu1 %v2736_v1 }
0x1249   :  { %v1108_v63 = vpop.f32.mrf.mxu1 }
0x124a   :  { %v1112_v29 = vadd.f32 %v1108_v63, %v2932_v42 }
0x124b   :  { %v2423_v33 = vpop.f32.mrf.mxu1 }
0x124c   :  { %2605 = vtanh.f32 %v1112_v29  ;;  %v2228_v17 = vmul.f32 -1.442695, %v1112_v29 }
0x124e   :  { %2607 = vpow2.f32 %v2228_v17 }
0x1251   :  { %v3112_v57 = vpop.f32.mrf.mxu1 }
0x1252   :  { %v1329_v26 = vadd.f32 %v3112_v57, %v3118_v62 }
0x1253   :  { %v1323_v61 = vpop.f32.mrf.mxu1 }
0x1254   :  { %v1324_v0 = vadd.f32 %v3118_v62, %v1323_v61 }
0x1259   :  { %v2606_v34 = vpop.eup %2605 }
0x125a   :  { %1122 = vrot.lane.b32.xlu0 %v2606_v34, %s2738_s4 }
0x125b   :  { %v2608_v37 = vpop.eup %2607 }
0x125c   :  { %v1116_v38 = vadd.f32 1.0, %v2608_v37 }
0x125e   :  { %2609 = vrcp.f32 %v1116_v38 }
0x126b   :  { %v2610_v36 = vpop.eup %2609 }
0x126c   :  { %v1120_v43 = vmul.f32 %v2610_v36, %v1030_v23 }
0x12cc   :  { %v1123_v40 = vpop.permute.xlu0 %1122 }
0x12cd   :  { %v1125_v41 = vmul.f32 %v2610_v36, %v1123_v40 }
0x12cf   :  { %1127 = vrot.lane.b32.xlu1 %v1125_v41, %s2739_s1 }
0x1341   :  { %v1128_v44 = vpop.permute.xlu1 %1127 }
0x1342   :  { %v3056_v48 = vadd.f32 %v1128_v44, %v1120_v43 }
0x1344   :  { %2611 = vtanh.f32 %v3056_v48 }
0x1351   :  { %v2612_v42 = vpop.eup %2611 }
0x1352   :  { %1133 = vrot.lane.b32.xlu0 %v2612_v42, %s2738_s4 }
0x13c4   :  { %v1134_v55 = vpop.permute.xlu0 %1133 }
0x13c5   :  { %v1136_v56 = vmul.f32 %v2610_v36, %v1134_v55  ;;  %v2448_v55 = vpop.f32.mrf.mxu1 }
0x13c7   :  { %1138 = vrot.lane.b32.xlu1 %v1136_v56, %s2739_s1  ;;  %v1333_v56 = vpop.f32.mrf.mxu1 }
0x1439   :  { %v1139_v32 = vpop.permute.xlu1 %1138 }
0x143a   :  { %2433 = vmatmul.mubr.msk.f32.vlgmr.msra.gmra.mxu0 %vm438_vm13, %v1139_v32  ;;  %2452 = vmatprep.mubr.msk.f32.mxu1 %vm438_vm13, %v1139_v32  ;;  %v3168_v32 = vpop.f32.mrf.mxu1 }
0x143b   :  { %2456 = vmatpush3.msra.mxu0 %v3063_v50  ;;  %2463 = vmatprep.mubr.msk.f32.mxu0 %vm2737_vm11, %v2736_v1 }
0x143c   :  { %2457 = vmatprep.subr.mxu0 %v2736_v1  ;;  %v3170_v57 = vpop.f32.mrf.mxu1 }
0x143d   :  { %2458 = vmatpush3.msra.mxu0 %v3069_v51 }
0x143e   :  { %2459 = vmatprep.subr.mxu0 %v2736_v1 }
0x143f   :  { %2460 = vmatpush3.msra.mxu0 %v3076_v53 }
0x1440   :  { %2461 = vmatprep.subr.mxu0 %v2736_v1 }
0x1441   :  { %2462 = vmatpush3.msra.mxu0 %v3083_v54 }
0x1442   :  { %2464 = vmatmul.mubr.f32.vlgmr.msra.gmra.mxu0 %v2736_v1  ;;  %2466 = vmatprep.subr.mxu0 %v2736_v1 }
0x1443   :  { %2467 = vmatpush3.msra.mxu0 %v3063_v50  ;;  %2474 = vmatprep.mubr.msk.f32.mxu0 %vm2737_vm11, %v2736_v1 }
0x1444   :  { %2468 = vmatprep.subr.mxu0 %v2736_v1 }
0x1445   :  { %2469 = vmatpush3.msra.mxu0 %v3069_v51 }
0x1446   :  { %2470 = vmatprep.subr.mxu0 %v2736_v1 }
0x1447   :  { %2471 = vmatpush3.msra.mxu0 %v3076_v53 }
0x1448   :  { %2472 = vmatprep.subr.mxu0 %v2736_v1 }
0x1449   :  { %2473 = vmatpush3.msra.mxu0 %v3083_v54 }
0x144a   :  { %2488 = vmatprep.subr.mxu0 %v2736_v1 }
0x14fa   :  { %v1208_v58 = vpop.f32.mrf.mxu0 }
0x14fb   :  { %v1212_v59 = vadd.f32 %v1208_v58, %v2934_v46 }
0x14fc   :  { %v2434_v60 = vpop.f32.mrf.mxu0 }
0x14fd   :  { %v2230_v45 = vmul.f32 -1.442695, %v1212_v59  ;;  %v1334_v60 = vadd.f32 %v3118_v62, %v1333_v56 }
0x1502   :  { %v1428_v2 = vpop.f32.mrf.mxu0 }
0x1503   :  { %v1432_v3 = vadd.f32 %v1428_v2, %v1324_v0 }
0x1504   :  { %v2465_v4 = vpop.f32.mrf.mxu0 }
0x1505   :  { %2613 = vtanh.f32 %v1432_v3  ;;  %v2240_v6 = vmul.f32 -1.442695, %v1432_v3 }
0x1507   :  { %2615 = vpow2.f32 %v2240_v6 }
0x1512   :  { %v2614_v5 = vpop.eup %2613 }
0x1513   :  { %1442 = vrot.lane.b32.xlu0 %v2614_v5, %s2738_s4 }
0x1514   :  { %v2616_v7 = vpop.eup %2615 }
0x1515   :  { %v1436_v46 = vadd.f32 1.0, %v2616_v7 }
0x1517   :  { %2617 = vrcp.f32 %v1436_v46 }
0x1524   :  { %v2618_v8 = vpop.eup %2617 }
0x1525   :  { %v1440_v35 = vmul.f32 0.0, %v2618_v8 }
0x1585   :  { %v1443_v9 = vpop.permute.xlu0 %1442 }
0x1586   :  { %v1445_v10 = vmul.f32 %v2618_v8, %v1443_v9 }
0x1588   :  { %1447 = vrot.lane.b32.xlu1 %v1445_v10, %s2739_s1 }
0x15fa   :  { %v1448_v11 = vpop.permute.xlu1 %1447 }
0x15fb   :  { %v1450_v12 = vadd.f32 %v1448_v11, %v1440_v35 }
0x15fd   :  { %2619 = vtanh.f32 %v1450_v12 }
0x15fe   :  { %2621 = vtanh.f32 %v1212_v59 }
0x15ff   :  { %2623 = vpow2.f32 %v2230_v45  ;;  %v1339_v45 = vadd.f32 %v2448_v55, %v3118_v62 }
0x160a   :  { %v2620_v13 = vpop.eup %2619 }
0x160b   :  { %1453 = vrot.lane.b32.xlu0 %v2620_v13, %s2738_s4  ;;  %v2622_v14 = vpop.eup %2621 }
0x160c   :  { %v2624_v15 = vpop.eup %2623 }
0x160d   :  { %v1216_v16 = vadd.f32 1.0, %v2624_v15 }
0x160f   :  { %1222 = vrot.lane.b32.xlu0 %v2622_v14, %s2738_s4  ;;  %2625 = vrcp.f32 %v1216_v16 }
0x161c   :  { %v2626_v19 = vpop.eup %2625 }
0x161d   :  { %v1220_v52 = vmul.f32 %v2626_v19, %v3056_v48 }
0x167d   :  { %v1454_v18 = vpop.permute.xlu0 %1453 }
0x167e   :  { %v1456_v47 = vmul.f32 %v2618_v8, %v1454_v18 }
0x1680   :  { %1458 = vrot.lane.b32.xlu1 %v1456_v47, %s2739_s1 }
0x1681   :  { %v1223_v49 = vpop.permute.xlu0 %1222 }
0x1682   :  { %v1225_v20 = vmul.f32 %v2626_v19, %v1223_v49 }
0x1684   :  { %1227 = vrot.lane.b32.xlu0 %v1225_v20, %s2739_s1 }
0x16f2   :  { %v1459_v21 = vpop.permute.xlu1 %1458 }
0x16f3   :  { %1461 = vst.msk [vmem:[%s3283_s8] sm:$0xff] %vm438_vm13, %v1459_v21  ;;  %2475 = vmatmul.mubr.msk.f32.vlgmr.msra.gmra.mxu0 %vm438_vm13, %v1459_v21 }
0x16f4   :  { %2489 = vmatpush3.msra.mxu0 %v3063_v50  ;;  %2496 = vmatprep.mubr.msk.f32.mxu0 %vm2737_vm11, %v2736_v1 }
0x16f5   :  { %2490 = vmatprep.subr.mxu0 %v2736_v1 }
0x16f6   :  { %v1228_v22 = vpop.permute.xlu0 %1227  ;;  %2491 = vmatpush3.msra.mxu0 %v3069_v51 }
0x16f7   :  { %v1230_v23 = vadd.f32 %v1228_v22, %v1220_v52  ;;  %2492 = vmatprep.subr.mxu0 %v2736_v1 }
0x16f8   :  { %2493 = vmatpush3.msra.mxu0 %v3076_v53 }
0x16f9   :  { %2627 = vtanh.f32 %v1230_v23  ;;  %2494 = vmatprep.subr.mxu0 %v2736_v1 }
0x16fa   :  { %2495 = vmatpush3.msra.mxu0 %v3083_v54 }
0x16fb   :  { %2510 = vmatprep.subr.mxu0 %v2736_v1 }
0x1706   :  { %v2628_v39 = vpop.eup %2627 }
0x1707   :  { %1233 = vrot.lane.b32.xlu0 %v2628_v39, %s2738_s4 }
0x1779   :  { %v1234_v24 = vpop.permute.xlu0 %1233 }
0x177a   :  { %v1236_v25 = vmul.f32 %v2626_v19, %v1234_v24 }
0x177c   :  { %1253 = vrot.lane.b32.xlu0 %v1236_v25, %s2739_s1 }
0x17b3   :  { %v1530_v27 = vpop.f32.mrf.mxu0 }
0x17b4   :  { %v1534_v28 = vadd.f32 %v1530_v27, %v1329_v26 }
0x17b5   :  { %v2476_v30 = vpop.f32.mrf.mxu0 }
0x17b6   :  { %2629 = vtanh.f32 %v1534_v28  ;;  %v2242_v29 = vmul.f32 -1.442695, %v1534_v28  ;;  %v1344_v30 = vadd.f32 %v3118_v62, %v3170_v57 }
0x17b8   :  { %2631 = vpow2.f32 %v2242_v29 }
0x17c3   :  { %v2630_v31 = vpop.eup %2629 }
0x17c4   :  { %1544 = vrot.lane.b32.xlu1 %v2630_v31, %s2738_s4 }
0x17c5   :  { %v2632_v33 = vpop.eup %2631 }
0x17c6   :  { %v1538_v34 = vadd.f32 1.0, %v2632_v33 }
0x17c8   :  { %2633 = vrcp.f32 %v1538_v34 }
0x17d5   :  { %v2634_v17 = vpop.eup %2633 }
0x17d6   :  { %v1542_v36 = vmul.f32 %v2634_v17, %v1450_v12 }
0x17ee   :  { %v1254_v63 = vpop.permute.xlu0 %1253 }
0x17ef   :  { %2453 = vmatmul.mubr.msk.f32.gmra.mxu1 %vm438_vm13, %v1254_v63 }
0x17f0   :  { %2485 = vmatprep.mubr.msk.f32.mxu1 %vm2737_vm11, %v2736_v1 }
0x1836   :  { %v1545_v37 = vpop.permute.xlu1 %1544 }
0x1837   :  { %v1547_v38 = vmul.f32 %v2634_v17, %v1545_v37 }
0x1839   :  { %1549 = vrot.lane.b32.xlu1 %v1547_v38, %s2739_s1 }
0x18ab   :  { %v1550_v40 = vpop.permute.xlu1 %1549 }
0x18ac   :  { %v1552_v41 = vadd.f32 %v1550_v40, %v1542_v36 }
0x18ae   :  { %2635 = vtanh.f32 %v1552_v41 }
0x18af   :  { %v3172_v58 = vpop.f32.mrf.mxu1 }
0x18b1   :  { %v3174_v59 = vpop.f32.mrf.mxu1 }
0x18bb   :  { %v2636_v43 = vpop.eup %2635 }
0x18bc   :  { %1555 = vrot.lane.b32.xlu1 %v2636_v43, %s2738_s4 }
0x192e   :  { %v1556_v44 = vpop.permute.xlu1 %1555 }
0x192f   :  { %v3153_v48 = vmul.f32 %v2634_v17, %v1556_v44 }
0x1931   :  { %1565 = vrot.lane.b32.xlu1 %v3153_v48, %s2739_s1 }
0x19a3   :  { %v1566_v42 = vpop.permute.xlu1 %1565 }
0x19a4   :  { %2486 = vmatmul.mubr.msk.f32.vlgmr.msra.gmra.mxu1 %vm438_vm13, %v1566_v42 }
0x19a5   :  { %2500 = vmatpush3.msra.mxu1 %v3063_v50  ;;  %2507 = vmatprep.mubr.msk.f32.mxu1 %vm2737_vm11, %v2736_v1 }
0x19a6   :  { %2501 = vmatprep.subr.mxu1 %v2736_v1 }
0x19a7   :  { %2502 = vmatpush3.msra.mxu1 %v3069_v51 }
0x19a8   :  { %2503 = vmatprep.subr.mxu1 %v2736_v1 }
0x19a9   :  { %2504 = vmatpush3.msra.mxu1 %v3076_v53 }
0x19aa   :  { %2505 = vmatprep.subr.mxu1 %v2736_v1 }
0x19ab   :  { %2506 = vmatpush3.msra.mxu1 %v3083_v54 }
0x19ac   :  { %2521 = vmatprep.subr.mxu1 %v2736_v1 }
0x1a64   :  { %v1635_v61 = vpop.f32.mrf.mxu1 }
0x1a65   :  { %v1639_v0 = vadd.f32 %v1635_v61, %v1334_v60  ;;  %v1349_v60 = vadd.f32 %v3168_v32, %v3118_v62 }
0x1a66   :  { %v2487_v2 = vpop.f32.mrf.mxu1 }
0x1a67   :  { %2637 = vtanh.f32 %v1639_v0  ;;  %v2244_v4 = vmul.f32 -1.442695, %v1639_v0 }
0x1a69   :  { %2639 = vpow2.f32 %v2244_v4 }
0x1a74   :  { %v2638_v3 = vpop.eup %2637 }
0x1a75   :  { %1649 = vrot.lane.b32.xlu0 %v2638_v3, %s2738_s4 }
0x1a76   :  { %v2640_v5 = vpop.eup %2639 }
0x1a77   :  { %v1643_v6 = vadd.f32 1.0, %v2640_v5 }
0x1a79   :  { %2641 = vrcp.f32 %v1643_v6 }
0x1a86   :  { %v2642_v7 = vpop.eup %2641 }
0x1a87   :  { %v1647_v9 = vmul.f32 %v2642_v7, %v1552_v41 }
0x1ae7   :  { %v1650_v46 = vpop.permute.xlu0 %1649 }
0x1ae8   :  { %v1652_v8 = vmul.f32 %v2642_v7, %v1650_v46 }
0x1aea   :  { %1654 = vrot.lane.b32.xlu1 %v1652_v8, %s2739_s1 }
0x1b5c   :  { %v1655_v10 = vpop.permute.xlu1 %1654 }
0x1b5d   :  { %v1657_v35 = vadd.f32 %v1655_v10, %v1647_v9  ;;  %v1354_v10 = vadd.f32 %v3118_v62, %v3174_v59 }
0x1b5f   :  { %2643 = vtanh.f32 %v1657_v35 }
0x1b6c   :  { %v2644_v11 = vpop.eup %2643 }
0x1b6d   :  { %1660 = vrot.lane.b32.xlu0 %v2644_v11, %s2738_s4 }
0x1bdf   :  { %v1661_v12 = vpop.permute.xlu0 %1660 }
0x1be0   :  { %v3180_v13 = vmul.f32 %v2642_v7, %v1661_v12 }
0x1be2   :  { %1670 = vrot.lane.b32.xlu1 %v3180_v13, %s2739_s1 }
0x1c54   :  { %v1671_v14 = vpop.permute.xlu1 %1670 }
0x1c55   :  { %2497 = vmatmul.mubr.msk.f32.vlgmr.msra.gmra.mxu0 %vm438_vm13, %v1671_v14 }
0x1c56   :  { %2511 = vmatpush3.msra.mxu0 %v3063_v50  ;;  %2518 = vmatprep.mubr.msk.f32.mxu0 %vm2737_vm11, %v2736_v1 }
0x1c57   :  { %2512 = vmatprep.subr.mxu0 %v2736_v1 }
0x1c58   :  { %2513 = vmatpush3.msra.mxu0 %v3069_v51 }
0x1c59   :  { %2514 = vmatprep.subr.mxu0 %v2736_v1 }
0x1c5a   :  { %2515 = vmatpush3.msra.mxu0 %v3076_v53 }
0x1c5b   :  { %2516 = vmatprep.subr.mxu0 %v2736_v1 }
0x1c5c   :  { %2517 = vmatpush3.msra.mxu0 %v3083_v54 }
0x1c5d   :  { %2532 = vmatprep.subr.mxu0 %v2736_v1 }
0x1d15   :  { %v1740_v15 = vpop.f32.mrf.mxu0 }
0x1d16   :  { %v1744_v16 = vadd.f32 %v1740_v15, %v1339_v45 }
0x1d17   :  { %v2498_v18 = vpop.f32.mrf.mxu0 }
0x1d18   :  { %2645 = vtanh.f32 %v1744_v16  ;;  %v2246_v19 = vmul.f32 -1.442695, %v1744_v16 }
0x1d1a   :  { %2647 = vpow2.f32 %v2246_v19 }
0x1d25   :  { %v2646_v47 = vpop.eup %2645 }
0x1d26   :  { %1754 = vrot.lane.b32.xlu0 %v2646_v47, %s2738_s4 }
0x1d27   :  { %v2648_v49 = vpop.eup %2647 }
0x1d28   :  { %v1748_v20 = vadd.f32 1.0, %v2648_v49 }
0x1d2a   :  { %2649 = vrcp.f32 %v1748_v20 }
0x1d37   :  { %v2650_v21 = vpop.eup %2649 }
0x1d38   :  { %v1752_v23 = vmul.f32 %v2650_v21, %v1657_v35 }
0x1d98   :  { %v1755_v52 = vpop.permute.xlu0 %1754 }
0x1d99   :  { %v1757_v22 = vmul.f32 %v2650_v21, %v1755_v52 }
0x1d9b   :  { %1759 = vrot.lane.b32.xlu1 %v1757_v22, %s2739_s1 }
0x1e0d   :  { %v1760_v39 = vpop.permute.xlu1 %1759 }
0x1e0e   :  { %v1762_v24 = vadd.f32 %v1760_v39, %v1752_v23  ;;  %v1359_v39 = vadd.f32 %v3172_v58, %v3118_v62 }
0x1e10   :  { %2651 = vtanh.f32 %v1762_v24 }
0x1e1d   :  { %v2652_v25 = vpop.eup %2651 }
0x1e1e   :  { %1765 = vrot.lane.b32.xlu0 %v2652_v25, %s2738_s4 }
0x1e90   :  { %v1766_v26 = vpop.permute.xlu0 %1765 }
0x1e91   :  { %v3199_v27 = vmul.f32 %v2650_v21, %v1766_v26 }
0x1e93   :  { %1772 = vrot.lane.b32.xlu1 %v3199_v27, %s2739_s1 }
0x1f05   :  { %v1773_v28 = vpop.permute.xlu1 %1772 }
0x1f06   :  { %2508 = vmatmul.mubr.msk.f32.vlgmr.msra.gmra.mxu1 %vm438_vm13, %v1773_v28 }
0x1f07   :  { %2522 = vmatpush3.msra.mxu1 %v3063_v50  ;;  %2529 = vmatprep.mubr.msk.f32.mxu1 %vm2737_vm11, %v2736_v1 }
0x1f08   :  { %2523 = vmatprep.subr.mxu1 %v2736_v1 }
0x1f09   :  { %2524 = vmatpush3.msra.mxu1 %v3069_v51 }
0x1f0a   :  { %2525 = vmatprep.subr.mxu1 %v2736_v1 }
0x1f0b   :  { %2526 = vmatpush3.msra.mxu1 %v3076_v53 }
0x1f0c   :  { %2527 = vmatprep.subr.mxu1 %v2736_v1 }
0x1f0d   :  { %2528 = vmatpush3.msra.mxu1 %v3083_v54 }
0x1fc6   :  { %v1842_v31 = vpop.f32.mrf.mxu1 }
0x1fc7   :  { %v1846_v63 = vadd.f32 %v1842_v31, %v1344_v30 }
0x1fc8   :  { %v2509_v29 = vpop.f32.mrf.mxu1 }
0x1fc9   :  { %2653 = vtanh.f32 %v1846_v63  ;;  %v2248_v34 = vmul.f32 -1.442695, %v1846_v63 }
0x1fcb   :  { %2655 = vpow2.f32 %v2248_v34 }
0x1fd6   :  { %v2654_v33 = vpop.eup %2653 }
0x1fd7   :  { %1856 = vrot.lane.b32.xlu0 %v2654_v33, %s2738_s4 }
0x1fd8   :  { %v2656_v17 = vpop.eup %2655 }
0x1fd9   :  { %v1850_v37 = vadd.f32 1.0, %v2656_v17 }
0x1fdb   :  { %2657 = vrcp.f32 %v1850_v37 }
0x1fe8   :  { %v2658_v38 = vpop.eup %2657 }
0x1fe9   :  { %v1854_v41 = vmul.f32 %v2658_v38, %v1762_v24 }
0x2049   :  { %v1857_v36 = vpop.permute.xlu0 %1856 }
0x204a   :  { %v1859_v40 = vmul.f32 %v2658_v38, %v1857_v36 }
0x204c   :  { %1861 = vrot.lane.b32.xlu1 %v1859_v40, %s2739_s1 }
0x20be   :  { %v1862_v43 = vpop.permute.xlu1 %1861 }
0x20bf   :  { %v1864_v44 = vadd.f32 %v1862_v43, %v1854_v41 }
0x20c1   :  { %2659 = vtanh.f32 %v1864_v44 }
0x20ce   :  { %v2660_v42 = vpop.eup %2659 }
0x20cf   :  { %1867 = vrot.lane.b32.xlu0 %v2660_v42, %s2738_s4 }
0x2141   :  { %v1868_v55 = vpop.permute.xlu0 %1867 }
0x2142   :  { %v1870_v56 = vmul.f32 %v2658_v38, %v1868_v55 }
0x2144   :  { %1872 = vrot.lane.b32.xlu1 %v1870_v56, %s2739_s1 }
0x21b6   :  { %v1873_v57 = vpop.permute.xlu1 %1872 }
0x21b7   :  { %1875 = vst.msk [vmem:[%s3283_s8 + $0x8] sm:$0xff] %vm438_vm13, %v1873_v57  ;;  %2519 = vmatmul.mubr.msk.f32.vlgmr.msra.gmra.mxu0 %vm438_vm13, %v1873_v57 }
0x21b8   :  { %2533 = vmatpush3.msra.mxu0 %v3063_v50  ;;  %2540 = vmatprep.mubr.msk.f32.mxu0 %vm2737_vm11, %v2736_v1 }
0x21b9   :  { %2534 = vmatprep.subr.mxu0 %v2736_v1 }
0x21ba   :  { %2535 = vmatpush3.msra.mxu0 %v3069_v51 }
0x21bb   :  { %2536 = vmatprep.subr.mxu0 %v2736_v1 }
0x21bc   :  { %2537 = vmatpush3.msra.mxu0 %v3076_v53 }
0x21bd   :  { %2538 = vmatprep.subr.mxu0 %v2736_v1 }
0x21be   :  { %2539 = vmatpush3.msra.mxu0 %v3083_v54 }
0x2277   :  { %v1944_v61 = vpop.f32.mrf.mxu0 }
0x2278   :  { %v1948_v50 = vadd.f32 %v1944_v61, %v1349_v60 }
0x2279   :  { %v2520_v0 = vpop.f32.mrf.mxu0 }
0x227a   :  { %2661 = vtanh.f32 %v1948_v50  ;;  %v2250_v3 = vmul.f32 -1.442695, %v1948_v50 }
0x227c   :  { %2663 = vpow2.f32 %v2250_v3 }
0x2287   :  { %v2662_v2 = vpop.eup %2661 }
0x2288   :  { %1958 = vrot.lane.b32.xlu0 %v2662_v2, %s2738_s4 }
0x2289   :  { %v2664_v51 = vpop.eup %2663 }
0x228a   :  { %v1952_v4 = vadd.f32 1.0, %v2664_v51 }
0x228c   :  { %2665 = vrcp.f32 %v1952_v4 }
0x2299   :  { %v2666_v53 = vpop.eup %2665 }
0x229a   :  { %v1956_v54 = vmul.f32 %v2666_v53, %v1864_v44 }
0x22fa   :  { %v1959_v5 = vpop.permute.xlu0 %1958 }
0x22fb   :  { %v1961_v1 = vmul.f32 %v2666_v53, %v1959_v5 }
0x22fd   :  { %1963 = vrot.lane.b32.xlu1 %v1961_v1, %s2739_s1 }
0x236f   :  { %v1964_v6 = vpop.permute.xlu1 %1963 }
0x2370   :  { %v1966_v32 = vadd.f32 %v1964_v6, %v1956_v54 }
0x2372   :  { %2667 = vtanh.f32 %v1966_v32 }
0x237f   :  { %v2668_v7 = vpop.eup %2667 }
0x2380   :  { %1969 = vrot.lane.b32.xlu0 %v2668_v7, %s2738_s4 }
0x23f2   :  { %v1970_v46 = vpop.permute.xlu0 %1969 }
0x23f3   :  { %v1972_v8 = vmul.f32 %v2666_v53, %v1970_v46 }
0x23f5   :  { %1978 = vrot.lane.b32.xlu1 %v1972_v8, %s2739_s1 }
0x2467   :  { %v1979_v9 = vpop.permute.xlu1 %1978 }
0x2468   :  { %2530 = vmatmul.mubr.msk.f32.vlgmr.msra.gmra.mxu1 %vm438_vm13, %v1979_v9 }
0x2528   :  { %v2048_v35 = vpop.f32.mrf.mxu1 }
0x2529   :  { %v2052_v11 = vadd.f32 %v2048_v35, %v1354_v10 }
0x252a   :  { %v2531_v12 = vpop.f32.mrf.mxu1 }
0x252b   :  { %2669 = vtanh.f32 %v2052_v11  ;;  %v2252_v45 = vmul.f32 -1.442695, %v2052_v11 }
0x252d   :  { %2671 = vpow2.f32 %v2252_v45 }
0x2538   :  { %v2670_v14 = vpop.eup %2669 }
0x2539   :  { %2062 = vrot.lane.b32.xlu0 %v2670_v14, %s2738_s4 }
0x253a   :  { %v2672_v15 = vpop.eup %2671 }
0x253b   :  { %v2056_v16 = vadd.f32 1.0, %v2672_v15 }
0x253d   :  { %2673 = vrcp.f32 %v2056_v16 }
0x254a   :  { %v2674_v18 = vpop.eup %2673 }
0x254b   :  { %v2060_v49 = vmul.f32 %v2674_v18, %v1966_v32 }
0x25ab   :  { %v2063_v47 = vpop.permute.xlu0 %2062 }
0x25ac   :  { %v2065_v19 = vmul.f32 %v2674_v18, %v2063_v47 }
0x25ae   :  { %2067 = vrot.lane.b32.xlu1 %v2065_v19, %s2739_s1 }
0x2620   :  { %v2068_v20 = vpop.permute.xlu1 %2067 }
0x2621   :  { %v2070_v59 = vadd.f32 %v2068_v20, %v2060_v49 }
0x2623   :  { %2675 = vtanh.f32 %v2070_v59 }
0x2630   :  { %v2676_v21 = vpop.eup %2675 }
0x2631   :  { %2073 = vrot.lane.b32.xlu0 %v2676_v21, %s2738_s4 }
0x26a3   :  { %v2074_v52 = vpop.permute.xlu0 %2073 }
0x26a4   :  { %v2076_v22 = vmul.f32 %v2674_v18, %v2074_v52 }
0x26a6   :  { %2082 = vrot.lane.b32.xlu1 %v2076_v22, %s2739_s1 }
0x2718   :  { %v2083_v23 = vpop.permute.xlu1 %2082 }
0x2719   :  { %2541 = vmatmul.mubr.msk.f32.vlgmr.msra.gmra.mxu0 %vm438_vm13, %v2083_v23 }
0x27d9   :  { %v2152_v24 = vpop.f32.mrf.mxu0 }
0x27da   :  { %v2156_v25 = vadd.f32 %v2152_v24, %v1359_v39 }
0x27db   :  { %v2542_v26 = vpop.f32.mrf.mxu0 }
0x27dc   :  { %2677 = vtanh.f32 %v2156_v25  ;;  %v2254_v30 = vmul.f32 -1.442695, %v2156_v25 }
0x27de   :  { %2679 = vpow2.f32 %v2254_v30 }
0x27e9   :  { %v2678_v28 = vpop.eup %2677 }
0x27ea   :  { %2166 = vrot.lane.b32.xlu0 %v2678_v28, %s2738_s4 }
0x27eb   :  { %v2680_v31 = vpop.eup %2679 }
0x27ec   :  { %v2160_v63 = vadd.f32 1.0, %v2680_v31 }
0x27ee   :  { %1560 = vrot.lane.b32.xlu0 %v3153_v48, %s2738_s4  ;;  %2681 = vrcp.f32 %v2160_v63 }
0x27fb   :  { %v2682_v29 = vpop.eup %2681 }
0x27fc   :  { %v2164_v48 = vmul.f32 %v2682_v29, %v2070_v59 }
0x285c   :  { %v2167_v33 = vpop.permute.xlu0 %2166 }
0x285d   :  { %v2169_v34 = vmul.f32 %v2682_v29, %v2167_v33 }
0x285f   :  { %2171 = vrot.lane.b32.xlu1 %v2169_v34, %s2739_s1 }
0x2860   :  { %v1561_v62 = vpop.permute.xlu0 %1560 }
0x2861   :  { %1564 = vst.msk [vmem:[%s3283_s8] sm:$0xff] %vm1563_vm14, %v1561_v62 }
0x2863   :  { %1974 = vrot.lane.b32.xlu1 %v1972_v8, %s2738_s4 }
0x2867   :  { %1665 = vrot.lane.b32.xlu1 %v3180_v13, %s2740_s16 }
0x28d1   :  { %v2172_v58 = vpop.permute.xlu1 %2171 }
0x28d2   :  { %v2174_v17 = vadd.f32 %v2172_v58, %v2164_v48 }
0x28d4   :  { %2683 = vtanh.f32 %v2174_v17 }
0x28d5   :  { %v1975_v37 = vpop.permute.xlu1 %1974 }
0x28d6   :  { %1977 = vst.msk [vmem:[%s3283_s8 + $0x8] sm:$0xff] %vm1563_vm14, %v1975_v37 }
0x28d9   :  { %v1666_v38 = vpop.permute.xlu1 %1665 }
0x28da   :  { %1669 = vst.msk [vmem:[%s3283_s8] sm:$0xff] %vm1668_vm15, %v1666_v38 }
0x28db   :  { %1770 = vst.msk [vmem:[%s3283_s8] sm:$0xff] %vm1769_vm0, %v3199_v27 }
0x28e1   :  { %v2684_v13 = vpop.eup %2683 }
0x28e2   :  { %2177 = vrot.lane.b32.xlu0 %v2684_v13, %s2738_s4 }
0x28e6   :  { %2078 = vrot.lane.b32.xlu0 %v2076_v22, %s2740_s16 }
0x2954   :  { %v2178_v36 = vpop.permute.xlu0 %2177 }
0x2955   :  { %v2180_v40 = vmul.f32 %v2682_v29, %v2178_v36 }
0x2958   :  { %v2079_v41 = vpop.permute.xlu0 %2078 }
0x2959   :  { %2081 = vst.msk [vmem:[%s3283_s8 + $0x8] sm:$0xff] %vm1668_vm15, %v2079_v41 }
0x295a   :  { %2181 = vst.msk [vmem:[%s3283_s8 + $0x8] sm:$0xff] %vm1769_vm0, %v2180_v40 }
0x295b   :  { %2186 = vsyncpa [#allocation3], 1 }
0x295c   :  { %2187 = vsyncpa [#allocation5], 1 }

</bundles_post_ra>
